<compile_context>
chip_gen: v5e
topology: v5e:2x2
jax: 0.10.0
libtpu: 0.0.40
codegen_flags: <defaults>
</compile_context>

<pallas_src>
import jax
import jax.numpy as jnp
import numpy as np
from jax.experimental import pallas as pl
from jax.experimental.pallas import tpu as pltpu


# ---------------------------------------------------------------------------
# Pallas kernel: whole Seq2Seq forward in one invocation
# ---------------------------------------------------------------------------

def seq2seq_kernel(src_ref, enc_wih_ref, enc_whh_ref, enc_b_ref,
                   dec_wih_ref, dec_whh_ref, dec_b_ref,
                   wfc_ref, bfc_ref, out_ref):
    B, T_q, O = out_ref.shape
    TB, _ = src_ref.shape
    T_src = TB // B
    H = enc_whh_ref.shape[0]

    # Hoist all weight loads out of the time loops (VMEM -> vregs once).
    enc_whh = enc_whh_ref[...]
    dec_wih = dec_wih_ref[...]
    dec_whh = dec_whh_ref[...]
    dec_b = dec_b_ref[...]
    wfc = wfc_ref[...]
    bfc = bfc_ref[...]

    # ---- batched encoder input projection (independent of the recurrence) ---
    # One (T_src*B, D) x (D, 4H) MXU matmul + ONE bias broadcast for all steps.
    gx_all = (jnp.dot(src_ref[...], enc_wih_ref[...],
                      preferred_element_type=jnp.float32)
              + enc_b_ref[...])                              # (T_src*B, 4H)

    # ---- fold the decoder Linear into the recurrence matrix ------------------
    # x_t = y_{t-1} = h_{t-1} @ wfc + bfc   (teacher forcing off)  =>
    # gates_t = h_{t-1} @ (dec_whh + wfc @ dec_wih) + (dec_b + bfc @ dec_wih)
    w_comb = dec_whh + jnp.dot(wfc, dec_wih, preferred_element_type=jnp.float32)
    b_comb = dec_b + jnp.dot(bfc, dec_wih, preferred_element_type=jnp.float32)

    # Hoisted bias broadcasts (JAX does not CSE broadcast_in_dim in unrolled loops).
    b_comb_b = jnp.broadcast_to(b_comb, (B, 4 * H))
    dec_b_b = jnp.broadcast_to(dec_b, (B, 4 * H))
    bfc_b = jnp.broadcast_to(bfc, (B, O))

    def gates_to_hc(gates, c):
        # PyTorch LSTM gate order (i, f, g, o); one full-width (4H) sigmoid EUP pass.
        sig = jax.nn.sigmoid(gates)
        i_g = sig[:, 0 * H:1 * H]
        f_g = sig[:, 1 * H:2 * H]
        o_g = sig[:, 3 * H:4 * H]
        g_g = jnp.tanh(gates[:, 2 * H:3 * H])
        c_new = f_g * c + i_g * g_g
        h_new = o_g * jnp.tanh(c_new)
        return h_new, c_new

    # ---- encoder recurrence: one dependent matmul (h @ Whh) per step ---------
    h = jnp.zeros((B, H), jnp.float32)
    c = jnp.zeros((B, H), jnp.float32)
    for t in range(T_src):                                   # static unroll
        gates = gx_all[t * B:(t + 1) * B, :] + jnp.dot(
            h, enc_whh, preferred_element_type=jnp.float32)
        h, c = gates_to_hc(gates, c)

    # ---- decoder: autoregressive, ONE dependent matmul per step --------------
    for t in range(T_q):                                     # static unroll
        if t == 0:
            # inputs = torch.zeros(...), so the x @ dec_wih term vanishes.
            gates = jnp.dot(h, dec_whh, preferred_element_type=jnp.float32) + dec_b_b
        else:
            gates = jnp.dot(h, w_comb, preferred_element_type=jnp.float32) + b_comb_b
        h, c = gates_to_hc(gates, c)
        # The FC no longer feeds the next step (the fold absorbed it), so this
        # matmul + store are off the recurrence critical path. The output slab is
        # (B, T_q, O): 2 padded VMEM tiles, written back to HBM once.
        out_ref[:, t, :] = (jnp.dot(h, wfc, preferred_element_type=jnp.float32)
                            + bfc_b)


# ---------------------------------------------------------------------------
# pallas_call wrapper (mirrors Seq2Seq.forward with teacher_forcing_ratio = 0)
# ---------------------------------------------------------------------------

@jax.jit
def seq2seq_forward(src, trg, enc_p, dec_p):
    """src: (B, src_len, D); trg: (B, tq_len, O) (shape only). Returns (B, tq_len, O)."""
    B, src_len, D = src.shape
    tq_len = trg.shape[1]
    H = enc_p["whh"].shape[0]
    O = dec_p["wfc"].shape[1]

    # Flat time-major src: one (T*B, D) VMEM tile instead of 8 padded (8,128) tiles.
    # (transpose is a few hundred bytes; the reshape is row-major compatible / free)
    src_flat = jnp.transpose(src.astype(jnp.float32), (1, 0, 2)).reshape(src_len * B, D)

    out = pl.pallas_call(
        seq2seq_kernel,
        out_shape=jax.ShapeDtypeStruct((B, tq_len, O), jnp.float32),
        grid=(1,),                                  # single invocation; loops unrolled in-kernel
        in_specs=[
            pl.BlockSpec((src_len * B, D), lambda i: (0, 0)),
            pl.BlockSpec((D, 4 * H), lambda i: (0, 0)),
            pl.BlockSpec((H, 4 * H), lambda i: (0, 0)),
            pl.BlockSpec((1, 4 * H), lambda i: (0, 0)),
            pl.BlockSpec((O, 4 * H), lambda i: (0, 0)),
            pl.BlockSpec((H, 4 * H), lambda i: (0, 0)),
            pl.BlockSpec((1, 4 * H), lambda i: (0, 0)),
            pl.BlockSpec((H, O), lambda i: (0, 0)),
            pl.BlockSpec((1, O), lambda i: (0, 0)),
        ],
        out_specs=pl.BlockSpec((B, tq_len, O), lambda i: (0, 0, 0)),
        compiler_params=pltpu.CompilerParams(
            dimension_semantics=("arbitrary",)),
    )(src_flat, enc_p["wih"], enc_p["whh"], enc_p["b"],
      dec_p["wih"], dec_p["whh"], dec_p["b"], dec_p["wfc"], dec_p["bfc"])

    return out                                     # already (B, tq_len, O): no transpose


# ---------------------------------------------------------------------------
# Pure-JAX reference (for correctness check)
# ---------------------------------------------------------------------------

def _lstm_step_ref(x, h, c, wih, whh, b):
    gates = x @ wih + h @ whh + b
    H = h.shape[-1]
    i = jax.nn.sigmoid(gates[:, :H])
    f = jax.nn.sigmoid(gates[:, H:2 * H])
    g = jnp.tanh(gates[:, 2 * H:3 * H])
    o = jax.nn.sigmoid(gates[:, 3 * H:])
    c2 = f * c + i * g
    return o * jnp.tanh(c2), c2


def reference_forward(src, tq_len, enc_p, dec_p):
    B = src.shape[0]
    H = enc_p["whh"].shape[0]
    h = jnp.zeros((B, H), jnp.float32)
    c = jnp.zeros((B, H), jnp.float32)
    for t in range(src.shape[1]):
        h, c = _lstm_step_ref(src[:, t, :].astype(jnp.float32), h, c,
                              enc_p["wih"], enc_p["whh"], enc_p["b"])
    O = dec_p["wfc"].shape[1]
    x = jnp.zeros((B, O), jnp.float32)
    outs = []
    for _ in range(tq_len):
        h, c = _lstm_step_ref(x, h, c, dec_p["wih"], dec_p["whh"], dec_p["b"])
        y = h @ dec_p["wfc"] + dec_p["bfc"]
        outs.append(y)
        x = y
    return jnp.stack(outs, axis=1)


# ---------------------------------------------------------------------------
# Deterministic parameter init (PyTorch-style U(-1/sqrt(H), 1/sqrt(H)))
# ---------------------------------------------------------------------------

def init_lstm_params(key, in_dim, hid_dim, out_dim=None):
    k = 1.0 / np.sqrt(hid_dim)
    keys = jax.random.split(key, 5)
    p = {
        "wih": jax.random.uniform(keys[0], (in_dim, 4 * hid_dim), jnp.float32, -k, k),
        "whh": jax.random.uniform(keys[1], (hid_dim, 4 * hid_dim), jnp.float32, -k, k),
        # b = b_ih + b_hh folded into one (1, 4H) row
        "b": jax.random.uniform(keys[2], (1, 4 * hid_dim), jnp.float32, -k, k),
    }
    if out_dim is not None:
        p["wfc"] = jax.random.uniform(keys[3], (hid_dim, out_dim), jnp.float32, -k, k)
        p["bfc"] = jax.random.uniform(keys[4], (1, out_dim), jnp.float32, -k, k)
    return p


if __name__ == "__main__":
    B, src_len, tq_len = 2, 8, 8
    enc_in_dim, hid_dim, output_dim = 4, 32, 4

    root = jax.random.PRNGKey(0)
    k_src, k_trg, k_enc, k_dec = jax.random.split(root, 4)

    src = jax.random.normal(k_src, (B, src_len, enc_in_dim), jnp.float32)
    trg = jax.random.normal(k_trg, (B, tq_len, output_dim), jnp.float32)

    enc_p = init_lstm_params(k_enc, enc_in_dim, hid_dim)
    dec_p = init_lstm_params(k_dec, output_dim, hid_dim, output_dim)

    out = seq2seq_forward(src, trg, enc_p, dec_p)
    out = jax.block_until_ready(out)

    ref = reference_forward(src, tq_len, enc_p, dec_p)
    # Slightly looser atol than before: the decoder fold reassociates the FP sums.
    np.testing.assert_allclose(np.asarray(out), np.asarray(ref),
                               rtol=1e-4, atol=2e-5)
    assert out.shape == (B, tq_len, output_dim)

    print("KERNEL_OK")
</pallas_src>

<mosaic_0001>
module attributes {stable_mosaic.version = 11 : i64} {
  func.func @seq2seq_kernel(%arg0: i32, %arg1: memref<16x4xf32, #tpu.memory_space<vmem>>, %arg2: memref<4x128xf32, #tpu.memory_space<vmem>>, %arg3: memref<32x128xf32, #tpu.memory_space<vmem>>, %arg4: memref<1x128xf32, #tpu.memory_space<vmem>>, %arg5: memref<4x128xf32, #tpu.memory_space<vmem>>, %arg6: memref<32x128xf32, #tpu.memory_space<vmem>>, %arg7: memref<1x128xf32, #tpu.memory_space<vmem>>, %arg8: memref<32x4xf32, #tpu.memory_space<vmem>>, %arg9: memref<1x4xf32, #tpu.memory_space<vmem>>, %arg10: memref<2x8x4xf32, #tpu.memory_space<vmem>>) attributes {dimension_semantics = [#tpu.dimension_semantics<arbitrary>], iteration_bounds = array<i64: 1>, scalar_prefetch = 0 : i64, scratch_operands = 0 : i64, tpu.core_type = #tpu.core_type<tc>, window_params = [{pipeline_mode = #tpu.pipeline_mode<synchronous>, transform_indices = @transform_0, window_bounds = array<i64: 16, 4>}, {pipeline_mode = #tpu.pipeline_mode<synchronous>, transform_indices = @transform_1, window_bounds = array<i64: 4, 128>}, {pipeline_mode = #tpu.pipeline_mode<synchronous>, transform_indices = @transform_2, window_bounds = array<i64: 32, 128>}, {pipeline_mode = #tpu.pipeline_mode<synchronous>, transform_indices = @transform_3, window_bounds = array<i64: 1, 128>}, {pipeline_mode = #tpu.pipeline_mode<synchronous>, transform_indices = @transform_4, window_bounds = array<i64: 4, 128>}, {pipeline_mode = #tpu.pipeline_mode<synchronous>, transform_indices = @transform_5, window_bounds = array<i64: 32, 128>}, {pipeline_mode = #tpu.pipeline_mode<synchronous>, transform_indices = @transform_6, window_bounds = array<i64: 1, 128>}, {pipeline_mode = #tpu.pipeline_mode<synchronous>, transform_indices = @transform_7, window_bounds = array<i64: 32, 4>}, {pipeline_mode = #tpu.pipeline_mode<synchronous>, transform_indices = @transform_8, window_bounds = array<i64: 1, 4>}, {pipeline_mode = #tpu.pipeline_mode<synchronous>, transform_indices = @transform_9, window_bounds = array<i64: 2, 8, 4>}]} {
    %c0 = arith.constant 0 : index
    %c0_0 = arith.constant 0 : index
    %0 = vector.load %arg3[%c0, %c0_0] : memref<32x128xf32, #tpu.memory_space<vmem>>, vector<32x128xf32>
    %c0_1 = arith.constant 0 : index
    %c0_2 = arith.constant 0 : index
    %1 = vector.load %arg5[%c0_1, %c0_2] : memref<4x128xf32, #tpu.memory_space<vmem>>, vector<4x128xf32>
    %c0_3 = arith.constant 0 : index
    %c0_4 = arith.constant 0 : index
    %2 = vector.load %arg6[%c0_3, %c0_4] : memref<32x128xf32, #tpu.memory_space<vmem>>, vector<32x128xf32>
    %c0_5 = arith.constant 0 : index
    %c0_6 = arith.constant 0 : index
    %3 = vector.load %arg7[%c0_5, %c0_6] : memref<1x128xf32, #tpu.memory_space<vmem>>, vector<1x128xf32>
    %c0_7 = arith.constant 0 : index
    %c0_8 = arith.constant 0 : index
    %4 = vector.load %arg8[%c0_7, %c0_8] : memref<32x4xf32, #tpu.memory_space<vmem>>, vector<32x4xf32>
    %c0_9 = arith.constant 0 : index
    %c0_10 = arith.constant 0 : index
    %5 = vector.load %arg9[%c0_9, %c0_10] : memref<1x4xf32, #tpu.memory_space<vmem>>, vector<1x4xf32>
    %c0_11 = arith.constant 0 : index
    %c0_12 = arith.constant 0 : index
    %6 = vector.load %arg1[%c0_11, %c0_12] : memref<16x4xf32, #tpu.memory_space<vmem>>, vector<16x4xf32>
    %c0_13 = arith.constant 0 : index
    %c0_14 = arith.constant 0 : index
    %7 = vector.load %arg2[%c0_13, %c0_14] : memref<4x128xf32, #tpu.memory_space<vmem>>, vector<4x128xf32>
    %cst = arith.constant dense<0.000000e+00> : vector<16x128xf32>
    %8 = tpu.matmul %6, %7, %cst {dimension_numbers = #tpu.dot_dimension_numbers<[1], [0], [0], [1], [0, 0, 1, 1], [], []>} : vector<16x4xf32>, vector<4x128xf32>, vector<16x128xf32> -> vector<16x128xf32>
    %c0_15 = arith.constant 0 : index
    %c0_16 = arith.constant 0 : index
    %9 = vector.load %arg4[%c0_15, %c0_16] : memref<1x128xf32, #tpu.memory_space<vmem>>, vector<1x128xf32>
    %10 = vector.broadcast %9 : vector<1x128xf32> to vector<16x128xf32>
    %11 = arith.addf %8, %10 : vector<16x128xf32>
    %cst_17 = arith.constant dense<0.000000e+00> : vector<32x128xf32>
    %12 = tpu.matmul %4, %1, %cst_17 {dimension_numbers = #tpu.dot_dimension_numbers<[1], [0], [0], [1], [0, 0, 1, 1], [], []>} : vector<32x4xf32>, vector<4x128xf32>, vector<32x128xf32> -> vector<32x128xf32>
    %13 = arith.addf %2, %12 : vector<32x128xf32>
    %cst_18 = arith.constant dense<0.000000e+00> : vector<1x128xf32>
    %14 = tpu.matmul %5, %1, %cst_18 {dimension_numbers = #tpu.dot_dimension_numbers<[1], [0], [0], [1], [0, 0, 1, 1], [], []>} : vector<1x4xf32>, vector<4x128xf32>, vector<1x128xf32> -> vector<1x128xf32>
    %15 = arith.addf %3, %14 : vector<1x128xf32>
    %16 = vector.shape_cast %15 : vector<1x128xf32> to vector<1x128xf32>
    %17 = vector.broadcast %16 : vector<1x128xf32> to vector<2x128xf32>
    %18 = vector.shape_cast %3 : vector<1x128xf32> to vector<1x128xf32>
    %19 = vector.broadcast %18 : vector<1x128xf32> to vector<2x128xf32>
    %20 = vector.shape_cast %5 : vector<1x4xf32> to vector<1x4xf32>
    %21 = vector.broadcast %20 : vector<1x4xf32> to vector<2x4xf32>
    %cst_19 = arith.constant 0.000000e+00 : f32
    %22 = vector.broadcast %cst_19 : f32 to vector<2x32xf32>
    %cst_20 = arith.constant 0.000000e+00 : f32
    %23 = vector.broadcast %cst_20 : f32 to vector<2x32xf32>
    %24 = vector.extract_strided_slice %11 {offsets = [0, 0], sizes = [2, 128], strides = [1, 1]} : vector<16x128xf32> to vector<2x128xf32>
    %cst_21 = arith.constant dense<0.000000e+00> : vector<2x128xf32>
    %25 = tpu.matmul %22, %0, %cst_21 {dimension_numbers = #tpu.dot_dimension_numbers<[1], [0], [0], [1], [0, 0, 1, 1], [], []>} : vector<2x32xf32>, vector<32x128xf32>, vector<2x128xf32> -> vector<2x128xf32>
    %26 = arith.addf %24, %25 : vector<2x128xf32>
    %27 = arith.negf %26 : vector<2x128xf32>
    %28 = math.exp %27 : vector<2x128xf32>
    %cst_22 = arith.constant 1.000000e+00 : f32
    %29 = vector.broadcast %cst_22 : f32 to vector<2x128xf32>
    %30 = arith.addf %29, %28 : vector<2x128xf32>
    %31 = arith.divf %29, %30 : vector<2x128xf32>
    %32 = vector.extract_strided_slice %31 {offsets = [0, 0], sizes = [2, 32], strides = [1, 1]} : vector<2x128xf32> to vector<2x32xf32>
    %33 = vector.extract_strided_slice %31 {offsets = [0, 32], sizes = [2, 32], strides = [1, 1]} : vector<2x128xf32> to vector<2x32xf32>
    %34 = vector.extract_strided_slice %31 {offsets = [0, 96], sizes = [2, 32], strides = [1, 1]} : vector<2x128xf32> to vector<2x32xf32>
    %35 = vector.extract_strided_slice %26 {offsets = [0, 64], sizes = [2, 32], strides = [1, 1]} : vector<2x128xf32> to vector<2x32xf32>
    %36 = math.tanh %35 : vector<2x32xf32>
    %37 = arith.mulf %33, %23 : vector<2x32xf32>
    %38 = arith.mulf %32, %36 : vector<2x32xf32>
    %39 = arith.addf %37, %38 : vector<2x32xf32>
    %40 = math.tanh %39 : vector<2x32xf32>
    %41 = arith.mulf %34, %40 : vector<2x32xf32>
    %42 = vector.extract_strided_slice %11 {offsets = [2, 0], sizes = [2, 128], strides = [1, 1]} : vector<16x128xf32> to vector<2x128xf32>
    %cst_23 = arith.constant dense<0.000000e+00> : vector<2x128xf32>
    %43 = tpu.matmul %41, %0, %cst_23 {dimension_numbers = #tpu.dot_dimension_numbers<[1], [0], [0], [1], [0, 0, 1, 1], [], []>} : vector<2x32xf32>, vector<32x128xf32>, vector<2x128xf32> -> vector<2x128xf32>
    %44 = arith.addf %42, %43 : vector<2x128xf32>
    %45 = arith.negf %44 : vector<2x128xf32>
    %46 = math.exp %45 : vector<2x128xf32>
    %cst_24 = arith.constant 1.000000e+00 : f32
    %47 = vector.broadcast %cst_24 : f32 to vector<2x128xf32>
    %48 = arith.addf %47, %46 : vector<2x128xf32>
    %49 = arith.divf %47, %48 : vector<2x128xf32>
    %50 = vector.extract_strided_slice %49 {offsets = [0, 0], sizes = [2, 32], strides = [1, 1]} : vector<2x128xf32> to vector<2x32xf32>
    %51 = vector.extract_strided_slice %49 {offsets = [0, 32], sizes = [2, 32], strides = [1, 1]} : vector<2x128xf32> to vector<2x32xf32>
    %52 = vector.extract_strided_slice %49 {offsets = [0, 96], sizes = [2, 32], strides = [1, 1]} : vector<2x128xf32> to vector<2x32xf32>
    %53 = vector.extract_strided_slice %44 {offsets = [0, 64], sizes = [2, 32], strides = [1, 1]} : vector<2x128xf32> to vector<2x32xf32>
    %54 = math.tanh %53 : vector<2x32xf32>
    %55 = arith.mulf %51, %39 : vector<2x32xf32>
    %56 = arith.mulf %50, %54 : vector<2x32xf32>
    %57 = arith.addf %55, %56 : vector<2x32xf32>
    %58 = math.tanh %57 : vector<2x32xf32>
    %59 = arith.mulf %52, %58 : vector<2x32xf32>
    %60 = vector.extract_strided_slice %11 {offsets = [4, 0], sizes = [2, 128], strides = [1, 1]} : vector<16x128xf32> to vector<2x128xf32>
    %cst_25 = arith.constant dense<0.000000e+00> : vector<2x128xf32>
    %61 = tpu.matmul %59, %0, %cst_25 {dimension_numbers = #tpu.dot_dimension_numbers<[1], [0], [0], [1], [0, 0, 1, 1], [], []>} : vector<2x32xf32>, vector<32x128xf32>, vector<2x128xf32> -> vector<2x128xf32>
    %62 = arith.addf %60, %61 : vector<2x128xf32>
    %63 = arith.negf %62 : vector<2x128xf32>
    %64 = math.exp %63 : vector<2x128xf32>
    %cst_26 = arith.constant 1.000000e+00 : f32
    %65 = vector.broadcast %cst_26 : f32 to vector<2x128xf32>
    %66 = arith.addf %65, %64 : vector<2x128xf32>
    %67 = arith.divf %65, %66 : vector<2x128xf32>
    %68 = vector.extract_strided_slice %67 {offsets = [0, 0], sizes = [2, 32], strides = [1, 1]} : vector<2x128xf32> to vector<2x32xf32>
    %69 = vector.extract_strided_slice %67 {offsets = [0, 32], sizes = [2, 32], strides = [1, 1]} : vector<2x128xf32> to vector<2x32xf32>
    %70 = vector.extract_strided_slice %67 {offsets = [0, 96], sizes = [2, 32], strides = [1, 1]} : vector<2x128xf32> to vector<2x32xf32>
    %71 = vector.extract_strided_slice %62 {offsets = [0, 64], sizes = [2, 32], strides = [1, 1]} : vector<2x128xf32> to vector<2x32xf32>
    %72 = math.tanh %71 : vector<2x32xf32>
    %73 = arith.mulf %69, %57 : vector<2x32xf32>
    %74 = arith.mulf %68, %72 : vector<2x32xf32>
    %75 = arith.addf %73, %74 : vector<2x32xf32>
    %76 = math.tanh %75 : vector<2x32xf32>
    %77 = arith.mulf %70, %76 : vector<2x32xf32>
    %78 = vector.extract_strided_slice %11 {offsets = [6, 0], sizes = [2, 128], strides = [1, 1]} : vector<16x128xf32> to vector<2x128xf32>
    %cst_27 = arith.constant dense<0.000000e+00> : vector<2x128xf32>
    %79 = tpu.matmul %77, %0, %cst_27 {dimension_numbers = #tpu.dot_dimension_numbers<[1], [0], [0], [1], [0, 0, 1, 1], [], []>} : vector<2x32xf32>, vector<32x128xf32>, vector<2x128xf32> -> vector<2x128xf32>
    %80 = arith.addf %78, %79 : vector<2x128xf32>
    %81 = arith.negf %80 : vector<2x128xf32>
    %82 = math.exp %81 : vector<2x128xf32>
    %cst_28 = arith.constant 1.000000e+00 : f32
    %83 = vector.broadcast %cst_28 : f32 to vector<2x128xf32>
    %84 = arith.addf %83, %82 : vector<2x128xf32>
    %85 = arith.divf %83, %84 : vector<2x128xf32>
    %86 = vector.extract_strided_slice %85 {offsets = [0, 0], sizes = [2, 32], strides = [1, 1]} : vector<2x128xf32> to vector<2x32xf32>
    %87 = vector.extract_strided_slice %85 {offsets = [0, 32], sizes = [2, 32], strides = [1, 1]} : vector<2x128xf32> to vector<2x32xf32>
    %88 = vector.extract_strided_slice %85 {offsets = [0, 96], sizes = [2, 32], strides = [1, 1]} : vector<2x128xf32> to vector<2x32xf32>
    %89 = vector.extract_strided_slice %80 {offsets = [0, 64], sizes = [2, 32], strides = [1, 1]} : vector<2x128xf32> to vector<2x32xf32>
    %90 = math.tanh %89 : vector<2x32xf32>
    %91 = arith.mulf %87, %75 : vector<2x32xf32>
    %92 = arith.mulf %86, %90 : vector<2x32xf32>
    %93 = arith.addf %91, %92 : vector<2x32xf32>
    %94 = math.tanh %93 : vector<2x32xf32>
    %95 = arith.mulf %88, %94 : vector<2x32xf32>
    %96 = vector.extract_strided_slice %11 {offsets = [8, 0], sizes = [2, 128], strides = [1, 1]} : vector<16x128xf32> to vector<2x128xf32>
    %cst_29 = arith.constant dense<0.000000e+00> : vector<2x128xf32>
    %97 = tpu.matmul %95, %0, %cst_29 {dimension_numbers = #tpu.dot_dimension_numbers<[1], [0], [0], [1], [0, 0, 1, 1], [], []>} : vector<2x32xf32>, vector<32x128xf32>, vector<2x128xf32> -> vector<2x128xf32>
    %98 = arith.addf %96, %97 : vector<2x128xf32>
    %99 = arith.negf %98 : vector<2x128xf32>
    %100 = math.exp %99 : vector<2x128xf32>
    %cst_30 = arith.constant 1.000000e+00 : f32
    %101 = vector.broadcast %cst_30 : f32 to vector<2x128xf32>
    %102 = arith.addf %101, %100 : vector<2x128xf32>
    %103 = arith.divf %101, %102 : vector<2x128xf32>
    %104 = vector.extract_strided_slice %103 {offsets = [0, 0], sizes = [2, 32], strides = [1, 1]} : vector<2x128xf32> to vector<2x32xf32>
    %105 = vector.extract_strided_slice %103 {offsets = [0, 32], sizes = [2, 32], strides = [1, 1]} : vector<2x128xf32> to vector<2x32xf32>
    %106 = vector.extract_strided_slice %103 {offsets = [0, 96], sizes = [2, 32], strides = [1, 1]} : vector<2x128xf32> to vector<2x32xf32>
    %107 = vector.extract_strided_slice %98 {offsets = [0, 64], sizes = [2, 32], strides = [1, 1]} : vector<2x128xf32> to vector<2x32xf32>
    %108 = math.tanh %107 : vector<2x32xf32>
    %109 = arith.mulf %105, %93 : vector<2x32xf32>
    %110 = arith.mulf %104, %108 : vector<2x32xf32>
    %111 = arith.addf %109, %110 : vector<2x32xf32>
    %112 = math.tanh %111 : vector<2x32xf32>
    %113 = arith.mulf %106, %112 : vector<2x32xf32>
    %114 = vector.extract_strided_slice %11 {offsets = [10, 0], sizes = [2, 128], strides = [1, 1]} : vector<16x128xf32> to vector<2x128xf32>
    %cst_31 = arith.constant dense<0.000000e+00> : vector<2x128xf32>
    %115 = tpu.matmul %113, %0, %cst_31 {dimension_numbers = #tpu.dot_dimension_numbers<[1], [0], [0], [1], [0, 0, 1, 1], [], []>} : vector<2x32xf32>, vector<32x128xf32>, vector<2x128xf32> -> vector<2x128xf32>
    %116 = arith.addf %114, %115 : vector<2x128xf32>
    %117 = arith.negf %116 : vector<2x128xf32>
    %118 = math.exp %117 : vector<2x128xf32>
    %cst_32 = arith.constant 1.000000e+00 : f32
    %119 = vector.broadcast %cst_32 : f32 to vector<2x128xf32>
    %120 = arith.addf %119, %118 : vector<2x128xf32>
    %121 = arith.divf %119, %120 : vector<2x128xf32>
    %122 = vector.extract_strided_slice %121 {offsets = [0, 0], sizes = [2, 32], strides = [1, 1]} : vector<2x128xf32> to vector<2x32xf32>
    %123 = vector.extract_strided_slice %121 {offsets = [0, 32], sizes = [2, 32], strides = [1, 1]} : vector<2x128xf32> to vector<2x32xf32>
    %124 = vector.extract_strided_slice %121 {offsets = [0, 96], sizes = [2, 32], strides = [1, 1]} : vector<2x128xf32> to vector<2x32xf32>
    %125 = vector.extract_strided_slice %116 {offsets = [0, 64], sizes = [2, 32], strides = [1, 1]} : vector<2x128xf32> to vector<2x32xf32>
    %126 = math.tanh %125 : vector<2x32xf32>
    %127 = arith.mulf %123, %111 : vector<2x32xf32>
    %128 = arith.mulf %122, %126 : vector<2x32xf32>
    %129 = arith.addf %127, %128 : vector<2x32xf32>
    %130 = math.tanh %129 : vector<2x32xf32>
    %131 = arith.mulf %124, %130 : vector<2x32xf32>
    %132 = vector.extract_strided_slice %11 {offsets = [12, 0], sizes = [2, 128], strides = [1, 1]} : vector<16x128xf32> to vector<2x128xf32>
    %cst_33 = arith.constant dense<0.000000e+00> : vector<2x128xf32>
    %133 = tpu.matmul %131, %0, %cst_33 {dimension_numbers = #tpu.dot_dimension_numbers<[1], [0], [0], [1], [0, 0, 1, 1], [], []>} : vector<2x32xf32>, vector<32x128xf32>, vector<2x128xf32> -> vector<2x128xf32>
    %134 = arith.addf %132, %133 : vector<2x128xf32>
    %135 = arith.negf %134 : vector<2x128xf32>
    %136 = math.exp %135 : vector<2x128xf32>
    %cst_34 = arith.constant 1.000000e+00 : f32
    %137 = vector.broadcast %cst_34 : f32 to vector<2x128xf32>
    %138 = arith.addf %137, %136 : vector<2x128xf32>
    %139 = arith.divf %137, %138 : vector<2x128xf32>
    %140 = vector.extract_strided_slice %139 {offsets = [0, 0], sizes = [2, 32], strides = [1, 1]} : vector<2x128xf32> to vector<2x32xf32>
    %141 = vector.extract_strided_slice %139 {offsets = [0, 32], sizes = [2, 32], strides = [1, 1]} : vector<2x128xf32> to vector<2x32xf32>
    %142 = vector.extract_strided_slice %139 {offsets = [0, 96], sizes = [2, 32], strides = [1, 1]} : vector<2x128xf32> to vector<2x32xf32>
    %143 = vector.extract_strided_slice %134 {offsets = [0, 64], sizes = [2, 32], strides = [1, 1]} : vector<2x128xf32> to vector<2x32xf32>
    %144 = math.tanh %143 : vector<2x32xf32>
    %145 = arith.mulf %141, %129 : vector<2x32xf32>
    %146 = arith.mulf %140, %144 : vector<2x32xf32>
    %147 = arith.addf %145, %146 : vector<2x32xf32>
    %148 = math.tanh %147 : vector<2x32xf32>
    %149 = arith.mulf %142, %148 : vector<2x32xf32>
    %150 = vector.extract_strided_slice %11 {offsets = [14, 0], sizes = [2, 128], strides = [1, 1]} : vector<16x128xf32> to vector<2x128xf32>
    %cst_35 = arith.constant dense<0.000000e+00> : vector<2x128xf32>
    %151 = tpu.matmul %149, %0, %cst_35 {dimension_numbers = #tpu.dot_dimension_numbers<[1], [0], [0], [1], [0, 0, 1, 1], [], []>} : vector<2x32xf32>, vector<32x128xf32>, vector<2x128xf32> -> vector<2x128xf32>
    %152 = arith.addf %150, %151 : vector<2x128xf32>
    %153 = arith.negf %152 : vector<2x128xf32>
    %154 = math.exp %153 : vector<2x128xf32>
    %cst_36 = arith.constant 1.000000e+00 : f32
    %155 = vector.broadcast %cst_36 : f32 to vector<2x128xf32>
    %156 = arith.addf %155, %154 : vector<2x128xf32>
    %157 = arith.divf %155, %156 : vector<2x128xf32>
    %158 = vector.extract_strided_slice %157 {offsets = [0, 0], sizes = [2, 32], strides = [1, 1]} : vector<2x128xf32> to vector<2x32xf32>
    %159 = vector.extract_strided_slice %157 {offsets = [0, 32], sizes = [2, 32], strides = [1, 1]} : vector<2x128xf32> to vector<2x32xf32>
    %160 = vector.extract_strided_slice %157 {offsets = [0, 96], sizes = [2, 32], strides = [1, 1]} : vector<2x128xf32> to vector<2x32xf32>
    %161 = vector.extract_strided_slice %152 {offsets = [0, 64], sizes = [2, 32], strides = [1, 1]} : vector<2x128xf32> to vector<2x32xf32>
    %162 = math.tanh %161 : vector<2x32xf32>
    %163 = arith.mulf %159, %147 : vector<2x32xf32>
    %164 = arith.mulf %158, %162 : vector<2x32xf32>
    %165 = arith.addf %163, %164 : vector<2x32xf32>
    %166 = math.tanh %165 : vector<2x32xf32>
    %167 = arith.mulf %160, %166 : vector<2x32xf32>
    %cst_37 = arith.constant dense<0.000000e+00> : vector<2x128xf32>
    %168 = tpu.matmul %167, %2, %cst_37 {dimension_numbers = #tpu.dot_dimension_numbers<[1], [0], [0], [1], [0, 0, 1, 1], [], []>} : vector<2x32xf32>, vector<32x128xf32>, vector<2x128xf32> -> vector<2x128xf32>
    %169 = arith.addf %168, %19 : vector<2x128xf32>
    %170 = arith.negf %169 : vector<2x128xf32>
    %171 = math.exp %170 : vector<2x128xf32>
    %cst_38 = arith.constant 1.000000e+00 : f32
    %172 = vector.broadcast %cst_38 : f32 to vector<2x128xf32>
    %173 = arith.addf %172, %171 : vector<2x128xf32>
    %174 = arith.divf %172, %173 : vector<2x128xf32>
    %175 = vector.extract_strided_slice %174 {offsets = [0, 0], sizes = [2, 32], strides = [1, 1]} : vector<2x128xf32> to vector<2x32xf32>
    %176 = vector.extract_strided_slice %174 {offsets = [0, 32], sizes = [2, 32], strides = [1, 1]} : vector<2x128xf32> to vector<2x32xf32>
    %177 = vector.extract_strided_slice %174 {offsets = [0, 96], sizes = [2, 32], strides = [1, 1]} : vector<2x128xf32> to vector<2x32xf32>
    %178 = vector.extract_strided_slice %169 {offsets = [0, 64], sizes = [2, 32], strides = [1, 1]} : vector<2x128xf32> to vector<2x32xf32>
    %179 = math.tanh %178 : vector<2x32xf32>
    %180 = arith.mulf %176, %165 : vector<2x32xf32>
    %181 = arith.mulf %175, %179 : vector<2x32xf32>
    %182 = arith.addf %180, %181 : vector<2x32xf32>
    %183 = math.tanh %182 : vector<2x32xf32>
    %184 = arith.mulf %177, %183 : vector<2x32xf32>
    %cst_39 = arith.constant dense<0.000000e+00> : vector<2x4xf32>
    %185 = tpu.matmul %184, %4, %cst_39 {dimension_numbers = #tpu.dot_dimension_numbers<[1], [0], [0], [1], [0, 0, 1, 1], [], []>} : vector<2x32xf32>, vector<32x4xf32>, vector<2x4xf32> -> vector<2x4xf32>
    %186 = arith.addf %185, %21 : vector<2x4xf32>
    %c0_40 = arith.constant 0 : index
    %c0_41 = arith.constant 0 : index
    %c0_42 = arith.constant 0 : index
    %187 = vector.load %arg10[%c0_40, %c0_41, %c0_42] : memref<2x8x4xf32, #tpu.memory_space<vmem>>, vector<2x1x4xf32>
    %188 = vector.shape_cast %187 : vector<2x1x4xf32> to vector<2x4xf32>
    %189 = vector.shape_cast %186 : vector<2x4xf32> to vector<2x1x4xf32>
    tpu.vector_store %arg10[%c0_40, %c0_41, %c0_42], %189 {strides = array<i32>} : memref<2x8x4xf32, #tpu.memory_space<vmem>>, vector<2x1x4xf32>,
    %cst_43 = arith.constant dense<0.000000e+00> : vector<2x128xf32>
    %190 = tpu.matmul %184, %13, %cst_43 {dimension_numbers = #tpu.dot_dimension_numbers<[1], [0], [0], [1], [0, 0, 1, 1], [], []>} : vector<2x32xf32>, vector<32x128xf32>, vector<2x128xf32> -> vector<2x128xf32>
    %191 = arith.addf %190, %17 : vector<2x128xf32>
    %192 = arith.negf %191 : vector<2x128xf32>
    %193 = math.exp %192 : vector<2x128xf32>
    %cst_44 = arith.constant 1.000000e+00 : f32
    %194 = vector.broadcast %cst_44 : f32 to vector<2x128xf32>
    %195 = arith.addf %194, %193 : vector<2x128xf32>
    %196 = arith.divf %194, %195 : vector<2x128xf32>
    %197 = vector.extract_strided_slice %196 {offsets = [0, 0], sizes = [2, 32], strides = [1, 1]} : vector<2x128xf32> to vector<2x32xf32>
    %198 = vector.extract_strided_slice %196 {offsets = [0, 32], sizes = [2, 32], strides = [1, 1]} : vector<2x128xf32> to vector<2x32xf32>
    %199 = vector.extract_strided_slice %196 {offsets = [0, 96], sizes = [2, 32], strides = [1, 1]} : vector<2x128xf32> to vector<2x32xf32>
    %200 = vector.extract_strided_slice %191 {offsets = [0, 64], sizes = [2, 32], strides = [1, 1]} : vector<2x128xf32> to vector<2x32xf32>
    %201 = math.tanh %200 : vector<2x32xf32>
    %202 = arith.mulf %198, %182 : vector<2x32xf32>
    %203 = arith.mulf %197, %201 : vector<2x32xf32>
    %204 = arith.addf %202, %203 : vector<2x32xf32>
    %205 = math.tanh %204 : vector<2x32xf32>
    %206 = arith.mulf %199, %205 : vector<2x32xf32>
    %cst_45 = arith.constant dense<0.000000e+00> : vector<2x4xf32>
    %207 = tpu.matmul %206, %4, %cst_45 {dimension_numbers = #tpu.dot_dimension_numbers<[1], [0], [0], [1], [0, 0, 1, 1], [], []>} : vector<2x32xf32>, vector<32x4xf32>, vector<2x4xf32> -> vector<2x4xf32>
    %208 = arith.addf %207, %21 : vector<2x4xf32>
    %c0_46 = arith.constant 0 : index
    %c1 = arith.constant 1 : index
    %c0_47 = arith.constant 0 : index
    %209 = vector.load %arg10[%c0_46, %c1, %c0_47] : memref<2x8x4xf32, #tpu.memory_space<vmem>>, vector<2x1x4xf32>
    %210 = vector.shape_cast %209 : vector<2x1x4xf32> to vector<2x4xf32>
    %211 = vector.shape_cast %208 : vector<2x4xf32> to vector<2x1x4xf32>
    tpu.vector_store %arg10[%c0_46, %c1, %c0_47], %211 {strides = array<i32>} : memref<2x8x4xf32, #tpu.memory_space<vmem>>, vector<2x1x4xf32>,
    %cst_48 = arith.constant dense<0.000000e+00> : vector<2x128xf32>
    %212 = tpu.matmul %206, %13, %cst_48 {dimension_numbers = #tpu.dot_dimension_numbers<[1], [0], [0], [1], [0, 0, 1, 1], [], []>} : vector<2x32xf32>, vector<32x128xf32>, vector<2x128xf32> -> vector<2x128xf32>
    %213 = arith.addf %212, %17 : vector<2x128xf32>
    %214 = arith.negf %213 : vector<2x128xf32>
    %215 = math.exp %214 : vector<2x128xf32>
    %cst_49 = arith.constant 1.000000e+00 : f32
    %216 = vector.broadcast %cst_49 : f32 to vector<2x128xf32>
    %217 = arith.addf %216, %215 : vector<2x128xf32>
    %218 = arith.divf %216, %217 : vector<2x128xf32>
    %219 = vector.extract_strided_slice %218 {offsets = [0, 0], sizes = [2, 32], strides = [1, 1]} : vector<2x128xf32> to vector<2x32xf32>
    %220 = vector.extract_strided_slice %218 {offsets = [0, 32], sizes = [2, 32], strides = [1, 1]} : vector<2x128xf32> to vector<2x32xf32>
    %221 = vector.extract_strided_slice %218 {offsets = [0, 96], sizes = [2, 32], strides = [1, 1]} : vector<2x128xf32> to vector<2x32xf32>
    %222 = vector.extract_strided_slice %213 {offsets = [0, 64], sizes = [2, 32], strides = [1, 1]} : vector<2x128xf32> to vector<2x32xf32>
    %223 = math.tanh %222 : vector<2x32xf32>
    %224 = arith.mulf %220, %204 : vector<2x32xf32>
    %225 = arith.mulf %219, %223 : vector<2x32xf32>
    %226 = arith.addf %224, %225 : vector<2x32xf32>
    %227 = math.tanh %226 : vector<2x32xf32>
    %228 = arith.mulf %221, %227 : vector<2x32xf32>
    %cst_50 = arith.constant dense<0.000000e+00> : vector<2x4xf32>
    %229 = tpu.matmul %228, %4, %cst_50 {dimension_numbers = #tpu.dot_dimension_numbers<[1], [0], [0], [1], [0, 0, 1, 1], [], []>} : vector<2x32xf32>, vector<32x4xf32>, vector<2x4xf32> -> vector<2x4xf32>
    %230 = arith.addf %229, %21 : vector<2x4xf32>
    %c0_51 = arith.constant 0 : index
    %c2 = arith.constant 2 : index
    %c0_52 = arith.constant 0 : index
    %231 = vector.load %arg10[%c0_51, %c2, %c0_52] : memref<2x8x4xf32, #tpu.memory_space<vmem>>, vector<2x1x4xf32>
    %232 = vector.shape_cast %231 : vector<2x1x4xf32> to vector<2x4xf32>
    %233 = vector.shape_cast %230 : vector<2x4xf32> to vector<2x1x4xf32>
    tpu.vector_store %arg10[%c0_51, %c2, %c0_52], %233 {strides = array<i32>} : memref<2x8x4xf32, #tpu.memory_space<vmem>>, vector<2x1x4xf32>,
    %cst_53 = arith.constant dense<0.000000e+00> : vector<2x128xf32>
    %234 = tpu.matmul %228, %13, %cst_53 {dimension_numbers = #tpu.dot_dimension_numbers<[1], [0], [0], [1], [0, 0, 1, 1], [], []>} : vector<2x32xf32>, vector<32x128xf32>, vector<2x128xf32> -> vector<2x128xf32>
    %235 = arith.addf %234, %17 : vector<2x128xf32>
    %236 = arith.negf %235 : vector<2x128xf32>
    %237 = math.exp %236 : vector<2x128xf32>
    %cst_54 = arith.constant 1.000000e+00 : f32
    %238 = vector.broadcast %cst_54 : f32 to vector<2x128xf32>
    %239 = arith.addf %238, %237 : vector<2x128xf32>
    %240 = arith.divf %238, %239 : vector<2x128xf32>
    %241 = vector.extract_strided_slice %240 {offsets = [0, 0], sizes = [2, 32], strides = [1, 1]} : vector<2x128xf32> to vector<2x32xf32>
    %242 = vector.extract_strided_slice %240 {offsets = [0, 32], sizes = [2, 32], strides = [1, 1]} : vector<2x128xf32> to vector<2x32xf32>
    %243 = vector.extract_strided_slice %240 {offsets = [0, 96], sizes = [2, 32], strides = [1, 1]} : vector<2x128xf32> to vector<2x32xf32>
    %244 = vector.extract_strided_slice %235 {offsets = [0, 64], sizes = [2, 32], strides = [1, 1]} : vector<2x128xf32> to vector<2x32xf32>
    %245 = math.tanh %244 : vector<2x32xf32>
    %246 = arith.mulf %242, %226 : vector<2x32xf32>
    %247 = arith.mulf %241, %245 : vector<2x32xf32>
    %248 = arith.addf %246, %247 : vector<2x32xf32>
    %249 = math.tanh %248 : vector<2x32xf32>
    %250 = arith.mulf %243, %249 : vector<2x32xf32>
    %cst_55 = arith.constant dense<0.000000e+00> : vector<2x4xf32>
    %251 = tpu.matmul %250, %4, %cst_55 {dimension_numbers = #tpu.dot_dimension_numbers<[1], [0], [0], [1], [0, 0, 1, 1], [], []>} : vector<2x32xf32>, vector<32x4xf32>, vector<2x4xf32> -> vector<2x4xf32>
    %252 = arith.addf %251, %21 : vector<2x4xf32>
    %c0_56 = arith.constant 0 : index
    %c3 = arith.constant 3 : index
    %c0_57 = arith.constant 0 : index
    %253 = vector.load %arg10[%c0_56, %c3, %c0_57] : memref<2x8x4xf32, #tpu.memory_space<vmem>>, vector<2x1x4xf32>
    %254 = vector.shape_cast %253 : vector<2x1x4xf32> to vector<2x4xf32>
    %255 = vector.shape_cast %252 : vector<2x4xf32> to vector<2x1x4xf32>
    tpu.vector_store %arg10[%c0_56, %c3, %c0_57], %255 {strides = array<i32>} : memref<2x8x4xf32, #tpu.memory_space<vmem>>, vector<2x1x4xf32>,
    %cst_58 = arith.constant dense<0.000000e+00> : vector<2x128xf32>
    %256 = tpu.matmul %250, %13, %cst_58 {dimension_numbers = #tpu.dot_dimension_numbers<[1], [0], [0], [1], [0, 0, 1, 1], [], []>} : vector<2x32xf32>, vector<32x128xf32>, vector<2x128xf32> -> vector<2x128xf32>
    %257 = arith.addf %256, %17 : vector<2x128xf32>
    %258 = arith.negf %257 : vector<2x128xf32>
    %259 = math.exp %258 : vector<2x128xf32>
    %cst_59 = arith.constant 1.000000e+00 : f32
    %260 = vector.broadcast %cst_59 : f32 to vector<2x128xf32>
    %261 = arith.addf %260, %259 : vector<2x128xf32>
    %262 = arith.divf %260, %261 : vector<2x128xf32>
    %263 = vector.extract_strided_slice %262 {offsets = [0, 0], sizes = [2, 32], strides = [1, 1]} : vector<2x128xf32> to vector<2x32xf32>
    %264 = vector.extract_strided_slice %262 {offsets = [0, 32], sizes = [2, 32], strides = [1, 1]} : vector<2x128xf32> to vector<2x32xf32>
    %265 = vector.extract_strided_slice %262 {offsets = [0, 96], sizes = [2, 32], strides = [1, 1]} : vector<2x128xf32> to vector<2x32xf32>
    %266 = vector.extract_strided_slice %257 {offsets = [0, 64], sizes = [2, 32], strides = [1, 1]} : vector<2x128xf32> to vector<2x32xf32>
    %267 = math.tanh %266 : vector<2x32xf32>
    %268 = arith.mulf %264, %248 : vector<2x32xf32>
    %269 = arith.mulf %263, %267 : vector<2x32xf32>
    %270 = arith.addf %268, %269 : vector<2x32xf32>
    %271 = math.tanh %270 : vector<2x32xf32>
    %272 = arith.mulf %265, %271 : vector<2x32xf32>
    %cst_60 = arith.constant dense<0.000000e+00> : vector<2x4xf32>
    %273 = tpu.matmul %272, %4, %cst_60 {dimension_numbers = #tpu.dot_dimension_numbers<[1], [0], [0], [1], [0, 0, 1, 1], [], []>} : vector<2x32xf32>, vector<32x4xf32>, vector<2x4xf32> -> vector<2x4xf32>
    %274 = arith.addf %273, %21 : vector<2x4xf32>
    %c0_61 = arith.constant 0 : index
    %c4 = arith.constant 4 : index
    %c0_62 = arith.constant 0 : index
    %275 = vector.load %arg10[%c0_61, %c4, %c0_62] : memref<2x8x4xf32, #tpu.memory_space<vmem>>, vector<2x1x4xf32>
    %276 = vector.shape_cast %275 : vector<2x1x4xf32> to vector<2x4xf32>
    %277 = vector.shape_cast %274 : vector<2x4xf32> to vector<2x1x4xf32>
    tpu.vector_store %arg10[%c0_61, %c4, %c0_62], %277 {strides = array<i32>} : memref<2x8x4xf32, #tpu.memory_space<vmem>>, vector<2x1x4xf32>,
    %cst_63 = arith.constant dense<0.000000e+00> : vector<2x128xf32>
    %278 = tpu.matmul %272, %13, %cst_63 {dimension_numbers = #tpu.dot_dimension_numbers<[1], [0], [0], [1], [0, 0, 1, 1], [], []>} : vector<2x32xf32>, vector<32x128xf32>, vector<2x128xf32> -> vector<2x128xf32>
    %279 = arith.addf %278, %17 : vector<2x128xf32>
    %280 = arith.negf %279 : vector<2x128xf32>
    %281 = math.exp %280 : vector<2x128xf32>
    %cst_64 = arith.constant 1.000000e+00 : f32
    %282 = vector.broadcast %cst_64 : f32 to vector<2x128xf32>
    %283 = arith.addf %282, %281 : vector<2x128xf32>
    %284 = arith.divf %282, %283 : vector<2x128xf32>
    %285 = vector.extract_strided_slice %284 {offsets = [0, 0], sizes = [2, 32], strides = [1, 1]} : vector<2x128xf32> to vector<2x32xf32>
    %286 = vector.extract_strided_slice %284 {offsets = [0, 32], sizes = [2, 32], strides = [1, 1]} : vector<2x128xf32> to vector<2x32xf32>
    %287 = vector.extract_strided_slice %284 {offsets = [0, 96], sizes = [2, 32], strides = [1, 1]} : vector<2x128xf32> to vector<2x32xf32>
    %288 = vector.extract_strided_slice %279 {offsets = [0, 64], sizes = [2, 32], strides = [1, 1]} : vector<2x128xf32> to vector<2x32xf32>
    %289 = math.tanh %288 : vector<2x32xf32>
    %290 = arith.mulf %286, %270 : vector<2x32xf32>
    %291 = arith.mulf %285, %289 : vector<2x32xf32>
    %292 = arith.addf %290, %291 : vector<2x32xf32>
    %293 = math.tanh %292 : vector<2x32xf32>
    %294 = arith.mulf %287, %293 : vector<2x32xf32>
    %cst_65 = arith.constant dense<0.000000e+00> : vector<2x4xf32>
    %295 = tpu.matmul %294, %4, %cst_65 {dimension_numbers = #tpu.dot_dimension_numbers<[1], [0], [0], [1], [0, 0, 1, 1], [], []>} : vector<2x32xf32>, vector<32x4xf32>, vector<2x4xf32> -> vector<2x4xf32>
    %296 = arith.addf %295, %21 : vector<2x4xf32>
    %c0_66 = arith.constant 0 : index
    %c5 = arith.constant 5 : index
    %c0_67 = arith.constant 0 : index
    %297 = vector.load %arg10[%c0_66, %c5, %c0_67] : memref<2x8x4xf32, #tpu.memory_space<vmem>>, vector<2x1x4xf32>
    %298 = vector.shape_cast %297 : vector<2x1x4xf32> to vector<2x4xf32>
    %299 = vector.shape_cast %296 : vector<2x4xf32> to vector<2x1x4xf32>
    tpu.vector_store %arg10[%c0_66, %c5, %c0_67], %299 {strides = array<i32>} : memref<2x8x4xf32, #tpu.memory_space<vmem>>, vector<2x1x4xf32>,
    %cst_68 = arith.constant dense<0.000000e+00> : vector<2x128xf32>
    %300 = tpu.matmul %294, %13, %cst_68 {dimension_numbers = #tpu.dot_dimension_numbers<[1], [0], [0], [1], [0, 0, 1, 1], [], []>} : vector<2x32xf32>, vector<32x128xf32>, vector<2x128xf32> -> vector<2x128xf32>
    %301 = arith.addf %300, %17 : vector<2x128xf32>
    %302 = arith.negf %301 : vector<2x128xf32>
    %303 = math.exp %302 : vector<2x128xf32>
    %cst_69 = arith.constant 1.000000e+00 : f32
    %304 = vector.broadcast %cst_69 : f32 to vector<2x128xf32>
    %305 = arith.addf %304, %303 : vector<2x128xf32>
    %306 = arith.divf %304, %305 : vector<2x128xf32>
    %307 = vector.extract_strided_slice %306 {offsets = [0, 0], sizes = [2, 32], strides = [1, 1]} : vector<2x128xf32> to vector<2x32xf32>
    %308 = vector.extract_strided_slice %306 {offsets = [0, 32], sizes = [2, 32], strides = [1, 1]} : vector<2x128xf32> to vector<2x32xf32>
    %309 = vector.extract_strided_slice %306 {offsets = [0, 96], sizes = [2, 32], strides = [1, 1]} : vector<2x128xf32> to vector<2x32xf32>
    %310 = vector.extract_strided_slice %301 {offsets = [0, 64], sizes = [2, 32], strides = [1, 1]} : vector<2x128xf32> to vector<2x32xf32>
    %311 = math.tanh %310 : vector<2x32xf32>
    %312 = arith.mulf %308, %292 : vector<2x32xf32>
    %313 = arith.mulf %307, %311 : vector<2x32xf32>
    %314 = arith.addf %312, %313 : vector<2x32xf32>
    %315 = math.tanh %314 : vector<2x32xf32>
    %316 = arith.mulf %309, %315 : vector<2x32xf32>
    %cst_70 = arith.constant dense<0.000000e+00> : vector<2x4xf32>
    %317 = tpu.matmul %316, %4, %cst_70 {dimension_numbers = #tpu.dot_dimension_numbers<[1], [0], [0], [1], [0, 0, 1, 1], [], []>} : vector<2x32xf32>, vector<32x4xf32>, vector<2x4xf32> -> vector<2x4xf32>
    %318 = arith.addf %317, %21 : vector<2x4xf32>
    %c0_71 = arith.constant 0 : index
    %c6 = arith.constant 6 : index
    %c0_72 = arith.constant 0 : index
    %319 = vector.load %arg10[%c0_71, %c6, %c0_72] : memref<2x8x4xf32, #tpu.memory_space<vmem>>, vector<2x1x4xf32>
    %320 = vector.shape_cast %319 : vector<2x1x4xf32> to vector<2x4xf32>
    %321 = vector.shape_cast %318 : vector<2x4xf32> to vector<2x1x4xf32>
    tpu.vector_store %arg10[%c0_71, %c6, %c0_72], %321 {strides = array<i32>} : memref<2x8x4xf32, #tpu.memory_space<vmem>>, vector<2x1x4xf32>,
    %cst_73 = arith.constant dense<0.000000e+00> : vector<2x128xf32>
    %322 = tpu.matmul %316, %13, %cst_73 {dimension_numbers = #tpu.dot_dimension_numbers<[1], [0], [0], [1], [0, 0, 1, 1], [], []>} : vector<2x32xf32>, vector<32x128xf32>, vector<2x128xf32> -> vector<2x128xf32>
    %323 = arith.addf %322, %17 : vector<2x128xf32>
    %324 = arith.negf %323 : vector<2x128xf32>
    %325 = math.exp %324 : vector<2x128xf32>
    %cst_74 = arith.constant 1.000000e+00 : f32
    %326 = vector.broadcast %cst_74 : f32 to vector<2x128xf32>
    %327 = arith.addf %326, %325 : vector<2x128xf32>
    %328 = arith.divf %326, %327 : vector<2x128xf32>
    %329 = vector.extract_strided_slice %328 {offsets = [0, 0], sizes = [2, 32], strides = [1, 1]} : vector<2x128xf32> to vector<2x32xf32>
    %330 = vector.extract_strided_slice %328 {offsets = [0, 32], sizes = [2, 32], strides = [1, 1]} : vector<2x128xf32> to vector<2x32xf32>
    %331 = vector.extract_strided_slice %328 {offsets = [0, 96], sizes = [2, 32], strides = [1, 1]} : vector<2x128xf32> to vector<2x32xf32>
    %332 = vector.extract_strided_slice %323 {offsets = [0, 64], sizes = [2, 32], strides = [1, 1]} : vector<2x128xf32> to vector<2x32xf32>
    %333 = math.tanh %332 : vector<2x32xf32>
    %334 = arith.mulf %330, %314 : vector<2x32xf32>
    %335 = arith.mulf %329, %333 : vector<2x32xf32>
    %336 = arith.addf %334, %335 : vector<2x32xf32>
    %337 = math.tanh %336 : vector<2x32xf32>
    %338 = arith.mulf %331, %337 : vector<2x32xf32>
    %cst_75 = arith.constant dense<0.000000e+00> : vector<2x4xf32>
    %339 = tpu.matmul %338, %4, %cst_75 {dimension_numbers = #tpu.dot_dimension_numbers<[1], [0], [0], [1], [0, 0, 1, 1], [], []>} : vector<2x32xf32>, vector<32x4xf32>, vector<2x4xf32> -> vector<2x4xf32>
    %340 = arith.addf %339, %21 : vector<2x4xf32>
    %c0_76 = arith.constant 0 : index
    %c7 = arith.constant 7 : index
    %c0_77 = arith.constant 0 : index
    %341 = vector.load %arg10[%c0_76, %c7, %c0_77] : memref<2x8x4xf32, #tpu.memory_space<vmem>>, vector<2x1x4xf32>
    %342 = vector.shape_cast %341 : vector<2x1x4xf32> to vector<2x4xf32>
    %343 = vector.shape_cast %340 : vector<2x4xf32> to vector<2x1x4xf32>
    tpu.vector_store %arg10[%c0_76, %c7, %c0_77], %343 {strides = array<i32>} : memref<2x8x4xf32, #tpu.memory_space<vmem>>, vector<2x1x4xf32>,
    return
  }
  func.func @transform_0(%arg0: i32) -> (i32, i32) {
    %c0_i32 = arith.constant 0 : i32
    %c0_i32_0 = arith.constant 0 : i32
    %c0_i32_1 = arith.constant 0 : i32
    return %c0_i32, %c0_i32_0 : i32, i32
  }
  func.func @transform_1(%arg0: i32) -> (i32, i32) {
    %c0_i32 = arith.constant 0 : i32
    %c0_i32_0 = arith.constant 0 : i32
    %c0_i32_1 = arith.constant 0 : i32
    return %c0_i32, %c0_i32_0 : i32, i32
  }
  func.func @transform_2(%arg0: i32) -> (i32, i32) {
    %c0_i32 = arith.constant 0 : i32
    %c0_i32_0 = arith.constant 0 : i32
    %c0_i32_1 = arith.constant 0 : i32
    return %c0_i32, %c0_i32_0 : i32, i32
  }
  func.func @transform_3(%arg0: i32) -> (i32, i32) {
    %c0_i32 = arith.constant 0 : i32
    %c0_i32_0 = arith.constant 0 : i32
    %c0_i32_1 = arith.constant 0 : i32
    return %c0_i32, %c0_i32_0 : i32, i32
  }
  func.func @transform_4(%arg0: i32) -> (i32, i32) {
    %c0_i32 = arith.constant 0 : i32
    %c0_i32_0 = arith.constant 0 : i32
    %c0_i32_1 = arith.constant 0 : i32
    return %c0_i32, %c0_i32_0 : i32, i32
  }
  func.func @transform_5(%arg0: i32) -> (i32, i32) {
    %c0_i32 = arith.constant 0 : i32
    %c0_i32_0 = arith.constant 0 : i32
    %c0_i32_1 = arith.constant 0 : i32
    return %c0_i32, %c0_i32_0 : i32, i32
  }
  func.func @transform_6(%arg0: i32) -> (i32, i32) {
    %c0_i32 = arith.constant 0 : i32
    %c0_i32_0 = arith.constant 0 : i32
    %c0_i32_1 = arith.constant 0 : i32
    return %c0_i32, %c0_i32_0 : i32, i32
  }
  func.func @transform_7(%arg0: i32) -> (i32, i32) {
    %c0_i32 = arith.constant 0 : i32
    %c0_i32_0 = arith.constant 0 : i32
    %c0_i32_1 = arith.constant 0 : i32
    return %c0_i32, %c0_i32_0 : i32, i32
  }
  func.func @transform_8(%arg0: i32) -> (i32, i32) {
    %c0_i32 = arith.constant 0 : i32
    %c0_i32_0 = arith.constant 0 : i32
    %c0_i32_1 = arith.constant 0 : i32
    return %c0_i32, %c0_i32_0 : i32, i32
  }
  func.func @transform_9(%arg0: i32) -> (i32, i32, i32) {
    %c0_i32 = arith.constant 0 : i32
    %c0_i32_0 = arith.constant 0 : i32
    %c0_i32_1 = arith.constant 0 : i32
    %c0_i32_2 = arith.constant 0 : i32
    return %c0_i32, %c0_i32_0, %c0_i32_1 : i32, i32, i32
  }
}

</mosaic_0001>

<bundles_post_ra>
// kernel: seq2seq_forward.1
= control target key start
LH: loop header
LB: loop body
LE: loop exit
PB: predicated region body
PF: predicated region fallthrough
CT: control target
= control target key end

     0   :  { %14 = vsyncpa [#allocation3], 0  ;;  %s1654_s12 = smov [#allocation2]   ;;  %s1655_s14 = smov 128   ;;  %s2107_s0 = inlined_call_operand.vmem [shape: f32[16,4], index: 0, kind: input, shape index: {}]   ;;  %s2108_s1 = inlined_call_operand.vmem [shape: f32[4,128], index: 1, kind: input, shape index: {}]   ;;  %s2109_s2 = inlined_call_operand.vmem [shape: f32[32,128], index: 2, kind: input, shape index: {}]   ;;  %s2110_s3 = inlined_call_operand.vmem [shape: f32[1,128], index: 3, kind: input, shape index: {}]   ;;  %s2111_s4 = inlined_call_operand.vmem [shape: f32[4,128], index: 4, kind: input, shape index: {}]   ;;  %s2112_s5 = inlined_call_operand.hbm [shape: f32[32,128], index: 5, kind: input, shape index: {}]   ;;  %s2113_s6 = inlined_call_operand.vmem [shape: f32[1,128], index: 6, kind: input, shape index: {}]   ;;  %s2114_s7 = inlined_call_operand.vmem [shape: f32[32,4], index: 7, kind: input, shape index: {}]   ;;  %s2115_s8 = inlined_call_operand.vmem [shape: f32[1,4], index: 8, kind: input, shape index: {}]   ;;  %s2116_s9 = inlined_call_operand.vmem [shape: f32[2,8,4], index: 9, kind: output, shape index: {}]  }
   0x1   :  { %s29_s11 = sshll.u32 %s2112_s5, 4  ;;  %s31_s13 = sshll.u32 %s1654_s12, 4  ;;  %s30_s11 = int_to_ptr.hbm [resolvable:$true] %s29_s11  ;;  %s32_s13 = int_to_ptr.vmem [resolvable:$true] %s31_s13 }
   0x2   :  { %s1656_s15 = smov 8  }
   0x3   :  { %37 = dma.hbm_to_vmem [thread:$0]  %s30_s11, 512, %s32_s13, [#allocation3], %s1655_s14, %s1655_s14, %s1656_s15  }
   0x4   :  { %1652 = dma.done.wait [#allocation3], 512  }
   0x5   :  { %1653 = vsyncadd [#allocation3], 4294966784  ;;  %vm77_vm0 = vcmask 1043456   ;;  %v1716_v0 = vld [vmem:[%s2109_s2 + $0x18] sm:$0xff]  ;;  %v1721_v1 = vld [vmem:[%s2109_s2 + $0x10] sm:$0xff]  ;;  %vm70_vm1 = vcmask 31744  }
   0x6   :  { %200 = vmatpush.msra.mxu3 %v1716_v0  ;;  %v65_v2 = vld [vmem:[%s2108_s1] sm:$0xf]  ;;  %v1733_v4 = vld [vmem:[%s2109_s2 + $0x8] sm:$0xff]  ;;  %v1657_v6 = vmov 0.0   ;;  %s1658_s27 = smov 64   ;;  %vm184_vm6 = vcmask 261120  }
   0x7   :  { %v63_v3 = vld [vmem:[%s2107_s0] sm:$0xff]  ;;  %1442 = vmatpush.msk.msra.mxu0 %vm77_vm0, %v65_v2 }
   0x8   :  { %201 = vmatpush.msra.mxu3 %v1721_v1  ;;  %1443 = vmatmul.msk.f32.vlgmr.msra.gmra.mxu0 %vm70_vm1, %v63_v3  ;;  %v1741_v5 = vld [vmem:[%s2109_s2] sm:$0xff] }
   0x9   :  { %403 = vmatpush.msrb.mxu0 %v1716_v0  ;;  %v1764_v7 = vld [vmem:[%s2110_s3] ss:$0 sm:$0xff]  ;;  %s1659_s3 = smov 32  }
   0xa   :  { %202 = vmatpush.msra.mxu3 %v1733_v4  ;;  %v52_v32 = vld [vmem:[%s2111_s4] sm:$0xf] }
   0xb   :  { %404 = vmatpush.msrb.mxu0 %v1721_v1  ;;  %v62_v33 = vld [vmem:[%s2115_s8] sm:$0x1]  ;;  %1450 = vmatpush.msk.msra.mxu2 %vm77_vm0, %v52_v32 }
   0xc   :  { %203 = vmatpush.msra.mxu3 %v1741_v5  ;;  %1445 = vmatpush.msk.msra.mxu1 %vm77_vm0, %v52_v32 }
   0xd   :  { %204 = vmatmul.f32.vlgmr.msra.gmra.mxu3 %v1657_v6  ;;  %405 = vmatpush.msrb.mxu0 %v1733_v4 }
   0xe   :  { %333 = vmatpush.msrb.mxu3 %v1716_v0  ;;  %1451 = vmatmul.msk.f32.vlgmr.msra.gmra.mxu2 %vm70_vm1, %v62_v33 }
   0xf   :  { %406 = vmatpush.msrb.mxu0 %v1741_v5  ;;  %263 = vmatpush.msrb.mxu2 %v1716_v0 }
  0x10   :  { %334 = vmatpush.msrb.mxu3 %v1721_v1 }
  0x11   :  { %609 = vmatpush.msra.mxu0 %v1716_v0  ;;  %264 = vmatpush.msrb.mxu2 %v1721_v1 }
  0x12   :  { %335 = vmatpush.msrb.mxu3 %v1733_v4 }
  0x13   :  { %610 = vmatpush.msra.mxu0 %v1721_v1  ;;  %265 = vmatpush.msrb.mxu2 %v1733_v4 }
  0x14   :  { %336 = vmatpush.msrb.mxu3 %v1741_v5 }
  0x15   :  { %611 = vmatpush.msra.mxu0 %v1733_v4  ;;  %266 = vmatpush.msrb.mxu2 %v1741_v5 }
  0x16   :  { %539 = vmatpush.msra.mxu3 %v1716_v0 }
  0x17   :  { %612 = vmatpush.msra.mxu0 %v1741_v5  ;;  %473 = vmatpush.msra.mxu2 %v1716_v0 }
  0x18   :  { %540 = vmatpush.msra.mxu3 %v1721_v1 }
  0x19   :  { %474 = vmatpush.msra.mxu2 %v1721_v1 }
  0x1a   :  { %541 = vmatpush.msra.mxu3 %v1733_v4 }
  0x1b   :  { %475 = vmatpush.msra.mxu2 %v1733_v4 }
  0x1c   :  { %542 = vmatpush.msra.mxu3 %v1741_v5 }
  0x1d   :  { %476 = vmatpush.msra.mxu2 %v1741_v5 }
  0x85   :  { %v98_v8 = vpop.f32.mrf.mxu0 }
  0x86   :  { %v1767_v9 = vadd.f32 %v1764_v7, %v98_v8 }
  0x90   :  { %v205_v10 = vpop.f32.mrf.mxu3 }
  0x91   :  { %v208_v11 = vadd.f32 %v205_v10, %v1767_v9  ;;  %v1796_v37 = vpop.f32.mrf.mxu2 }
  0x93   :  { %1500 = vtanh.f32 %v208_v11  ;;  %v1452_v13 = vmul.f32 -1.442695, %v208_v11 }
  0x95   :  { %1502 = vpow2.f32 %v1452_v13 }
  0x99   :  { %v1501_v12 = vpop.eup %1500 }
  0x9a   :  { %231 = vrot.lane.b32.xlu0 %v1501_v12, %s1658_s27 }
  0x9b   :  { %v1503_v14 = vpop.eup %1502 }
  0x9c   :  { %v212_v15 = vadd.f32 1.0, %v1503_v14 }
  0x9e   :  { %1504 = vrcp.f32 %v212_v15  ;;  %v224_v21 = vand.u32 2147483648, %v212_v15  ;;  %vm218_vm3 = vweird.f32 %v212_v15  ;;  %v222_v22 = vand.u32 2147483647, %v212_v15 }
  0xa0   :  { %v225_v24 = vor.u32 1.1754944e-38, %v224_v21  ;;  %vm223_vm5 = vcmp.eq.f32.partialorder %v222_v22, 8.507059e+37 }
  0xa4   :  { %v1505_v16 = vpop.eup %1504 }
  0xa5   :  { %v214_v17 = vmul.f32 %v1505_v16, %v212_v15  ;;  %vm219_vm2 = vweird.f32 %v1505_v16 }
  0xa6   :  { %vm220_vm4 = vmor %vm218_vm3, %vm219_vm2 }
  0xa7   :  { %v215_v18 = vsub.f32 1.0, %v214_v17 }
  0xa9   :  { %v216_v19 = vmul.f32 %v1505_v16, %v215_v18 }
  0xab   :  { %v217_v20 = vadd.f32 %v1505_v16, %v216_v19 }
  0xad   :  { %v221_v23 = vsel %vm220_vm4, %v1505_v16, %v217_v20 }
  0xae   :  { %v226_v26 = vsel %vm223_vm5, %v225_v24, %v221_v23 }
  0xaf   :  { %v229_v28 = vmul.f32 0.0, %v226_v26 }
 0x10c   :  { %v232_v25 = vpop.permute.xlu0 %231 }
 0x10d   :  { %v234_v27 = vmul.f32 %v232_v25, %v226_v26 }
 0x10f   :  { %236 = vrot.lane.b32.xlu0 %v234_v27, %s1659_s3 }
 0x181   :  { %v237_v29 = vpop.permute.xlu0 %236 }
 0x182   :  { %v239_v30 = vadd.f32 %v237_v29, %v229_v28  ;;  %v64_v28 = vld [vmem:[%s2107_s0 + $0x8] sm:$0xff] }
 0x183   :  { %1444 = vmatmul.msk.f32.gmra.mxu0 %vm70_vm1, %v64_v28 }
 0x184   :  { %1506 = vtanh.f32 %v239_v30  ;;  %v296_v57 = vrot.slane %v239_v30, 6 }
 0x18a   :  { %v1507_v31 = vpop.eup %1506 }
 0x18b   :  { %242 = vrot.lane.b32.xlu1 %v1507_v31, %s1658_s27 }
 0x1fd   :  { %v243_v34 = vpop.permute.xlu1 %242 }
 0x1fe   :  { %v245_v35 = vmul.f32 %v243_v34, %v226_v26 }
 0x200   :  { %247 = vrot.lane.b32.xlu1 %v245_v35, %s1659_s3  ;;  %v101_v33 = vpop.f32.mrf.mxu0 }
 0x272   :  { %v248_v36 = vpop.permute.xlu1 %247 }
 0x273   :  { %1453 = vmatmul.msk.f32.vlgmr.msrb.gmra.mxu2 %vm184_vm6, %v248_v36 }
 0x274   :  { %679 = vmatpush.msrb.mxu2 %v1716_v0 }
 0x276   :  { %680 = vmatpush.msrb.mxu2 %v1721_v1 }
 0x278   :  { %681 = vmatpush.msrb.mxu2 %v1733_v4 }
 0x27a   :  { %682 = vmatpush.msrb.mxu2 %v1741_v5 }
 0x2f6   :  { %v268_v38 = vpop.f32.mrf.mxu2 }
 0x2f7   :  { %v272_v39 = vrot.slane %v268_v38, 6 }
 0x2f9   :  { %v274_v40 = vadd.f32 %v272_v39, %v1767_v9 }
 0x2fb   :  { %1508 = vtanh.f32 %v274_v40  ;;  %v1454_v42 = vmul.f32 -1.442695, %v274_v40 }
 0x2fd   :  { %1510 = vpow2.f32 %v1454_v42 }
 0x301   :  { %v1509_v41 = vpop.eup %1508 }
 0x302   :  { %300 = vrot.lane.b32.xlu2 %v1509_v41, %s1658_s27 }
 0x303   :  { %v1511_v43 = vpop.eup %1510 }
 0x304   :  { %v278_v44 = vadd.f32 1.0, %v1511_v43 }
 0x306   :  { %1512 = vrcp.f32 %v278_v44  ;;  %v290_v50 = vand.u32 2147483648, %v278_v44  ;;  %vm284_vm8 = vweird.f32 %v278_v44  ;;  %v288_v51 = vand.u32 2147483647, %v278_v44 }
 0x308   :  { %v291_v53 = vor.u32 1.1754944e-38, %v290_v50  ;;  %vm289_vm10 = vcmp.eq.f32.partialorder %v288_v51, 8.507059e+37 }
 0x30c   :  { %v1513_v45 = vpop.eup %1512 }
 0x30d   :  { %v280_v46 = vmul.f32 %v1513_v45, %v278_v44  ;;  %vm285_vm7 = vweird.f32 %v1513_v45 }
 0x30e   :  { %vm286_vm9 = vmor %vm284_vm8, %vm285_vm7 }
 0x30f   :  { %v281_v47 = vsub.f32 1.0, %v280_v46 }
 0x311   :  { %v282_v48 = vmul.f32 %v1513_v45, %v281_v47 }
 0x313   :  { %v283_v49 = vadd.f32 %v1513_v45, %v282_v48 }
 0x315   :  { %v287_v52 = vsel %vm286_vm9, %v1513_v45, %v283_v49 }
 0x316   :  { %v292_v55 = vsel %vm289_vm10, %v291_v53, %v287_v52 }
 0x317   :  { %v298_v58 = vmul.f32 %v296_v57, %v292_v55 }
 0x35c   :  { %v301_v54 = vpop.permute.xlu2 %300 }
 0x35d   :  { %v303_v56 = vmul.f32 %v301_v54, %v292_v55 }
 0x35f   :  { %305 = vrot.lane.b32.xlu2 %v303_v56, %s1659_s3 }
 0x3b9   :  { %v306_v59 = vpop.permute.xlu2 %305 }
 0x3ba   :  { %v308_v60 = vadd.f32 %v306_v59, %v298_v58 }
 0x3bc   :  { %1514 = vtanh.f32 %v308_v60  ;;  %v366_v23 = vrot.slane %v308_v60, 6 }
 0x3c2   :  { %v1515_v61 = vpop.eup %1514 }
 0x3c3   :  { %311 = vrot.lane.b32.xlu0 %v1515_v61, %s1658_s27 }
 0x435   :  { %v312_v62 = vpop.permute.xlu0 %311 }
 0x436   :  { %v314_v63 = vmul.f32 %v312_v62, %v292_v55  ;;  %v1821_v62 = vadd.f32 %v1764_v7, %v101_v33 }
 0x438   :  { %v316_v0 = vrot.slane %v314_v63, 2 }
 0x43a   :  { %317 = vrot.lane.b32.xlu1 %v316_v0, %s1659_s3 }
 0x4ac   :  { %v318_v1 = vpop.permute.xlu1 %317 }
 0x4ad   :  { %1455 = vmatmul.msk.f32.vlgmr.msrb.gmra.mxu3 %vm184_vm6, %v318_v1 }
 0x530   :  { %v338_v2 = vpop.f32.mrf.mxu3 }
 0x531   :  { %v342_v3 = vrot.slane %v338_v2, 4 }
 0x533   :  { %v344_v4 = vadd.f32 %v342_v3, %v1767_v9 }
 0x535   :  { %1516 = vtanh.f32 %v344_v4  ;;  %v1456_v6 = vmul.f32 -1.442695, %v344_v4 }
 0x537   :  { %1518 = vpow2.f32 %v1456_v6 }
 0x53b   :  { %v1517_v5 = vpop.eup %1516 }
 0x53c   :  { %370 = vrot.lane.b32.xlu2 %v1517_v5, %s1658_s27 }
 0x53d   :  { %v1519_v8 = vpop.eup %1518 }
 0x53e   :  { %v348_v10 = vadd.f32 1.0, %v1519_v8 }
 0x540   :  { %1520 = vrcp.f32 %v348_v10  ;;  %v360_v16 = vand.u32 2147483648, %v348_v10  ;;  %vm354_vm12 = vweird.f32 %v348_v10  ;;  %v358_v17 = vand.u32 2147483647, %v348_v10 }
 0x542   :  { %v361_v19 = vor.u32 1.1754944e-38, %v360_v16  ;;  %vm359_vm14 = vcmp.eq.f32.partialorder %v358_v17, 8.507059e+37 }
 0x546   :  { %v1521_v11 = vpop.eup %1520 }
 0x547   :  { %v350_v12 = vmul.f32 %v1521_v11, %v348_v10  ;;  %vm355_vm11 = vweird.f32 %v1521_v11 }
 0x548   :  { %vm356_vm13 = vmor %vm354_vm12, %vm355_vm11 }
 0x549   :  { %v351_v13 = vsub.f32 1.0, %v350_v12 }
 0x54b   :  { %v352_v14 = vmul.f32 %v1521_v11, %v351_v13 }
 0x54d   :  { %v353_v15 = vadd.f32 %v1521_v11, %v352_v14 }
 0x54f   :  { %v357_v18 = vsel %vm356_vm13, %v1521_v11, %v353_v15 }
 0x550   :  { %v362_v21 = vsel %vm359_vm14, %v361_v19, %v357_v18 }
 0x551   :  { %v368_v24 = vmul.f32 %v366_v23, %v362_v21 }
 0x596   :  { %v371_v20 = vpop.permute.xlu2 %370 }
 0x597   :  { %v373_v22 = vmul.f32 %v371_v20, %v362_v21 }
 0x599   :  { %375 = vrot.lane.b32.xlu0 %v373_v22, %s1659_s3 }
 0x60b   :  { %v376_v25 = vpop.permute.xlu0 %375 }
 0x60c   :  { %v378_v26 = vadd.f32 %v376_v25, %v368_v24 }
 0x60e   :  { %1522 = vtanh.f32 %v378_v26  ;;  %v436_v53 = vrot.slane %v378_v26, 6 }
 0x614   :  { %v1523_v27 = vpop.eup %1522 }
 0x615   :  { %381 = vrot.lane.b32.xlu1 %v1523_v27, %s1658_s27 }
 0x687   :  { %v382_v29 = vpop.permute.xlu1 %381 }
 0x688   :  { %v384_v30 = vmul.f32 %v382_v29, %v362_v21 }
 0x68a   :  { %v386_v31 = vrot.slane %v384_v30, 4 }
 0x68c   :  { %387 = vrot.lane.b32.xlu2 %v386_v31, %s1659_s3 }
 0x6e6   :  { %v388_v32 = vpop.permute.xlu2 %387 }
 0x6e7   :  { %1457 = vmatmul.msk.f32.vlgmr.msrb.gmra.mxu0 %vm184_vm6, %v388_v32 }
 0x764   :  { %v408_v34 = vpop.f32.mrf.mxu0 }
 0x765   :  { %v412_v35 = vrot.slane %v408_v34, 2 }
 0x767   :  { %v414_v36 = vadd.f32 %v412_v35, %v1767_v9 }
 0x769   :  { %1524 = vtanh.f32 %v414_v36  ;;  %v1458_v39 = vmul.f32 -1.442695, %v414_v36 }
 0x76b   :  { %1526 = vpow2.f32 %v1458_v39 }
 0x76f   :  { %v1525_v38 = vpop.eup %1524 }
 0x770   :  { %440 = vrot.lane.b32.xlu0 %v1525_v38, %s1658_s27 }
 0x771   :  { %v1527_v40 = vpop.eup %1526 }
 0x772   :  { %v418_v41 = vadd.f32 1.0, %v1527_v40 }
 0x774   :  { %1528 = vrcp.f32 %v418_v41  ;;  %v430_v47 = vand.u32 2147483648, %v418_v41  ;;  %vm424_vm0 = vweird.f32 %v418_v41  ;;  %v428_v48 = vand.u32 2147483647, %v418_v41 }
 0x776   :  { %v431_v49 = vor.u32 1.1754944e-38, %v430_v47  ;;  %vm429_vm3 = vcmp.eq.f32.partialorder %v428_v48, 8.507059e+37 }
 0x77a   :  { %v1529_v42 = vpop.eup %1528 }
 0x77b   :  { %v420_v43 = vmul.f32 %v1529_v42, %v418_v41  ;;  %vm425_vm15 = vweird.f32 %v1529_v42 }
 0x77c   :  { %vm426_vm2 = vmor %vm424_vm0, %vm425_vm15 }
 0x77d   :  { %v421_v44 = vsub.f32 1.0, %v420_v43 }
 0x77f   :  { %v422_v45 = vmul.f32 %v1529_v42, %v421_v44 }
 0x781   :  { %v423_v46 = vadd.f32 %v1529_v42, %v422_v45 }
 0x783   :  { %v427_v9 = vsel %vm426_vm2, %v1529_v42, %v423_v46 }
 0x784   :  { %v432_v51 = vsel %vm429_vm3, %v431_v49, %v427_v9 }
 0x785   :  { %v438_v54 = vmul.f32 %v436_v53, %v432_v51 }
 0x7e2   :  { %v441_v50 = vpop.permute.xlu0 %440 }
 0x7e3   :  { %v443_v52 = vmul.f32 %v441_v50, %v432_v51 }
 0x7e5   :  { %445 = vrot.lane.b32.xlu1 %v443_v52, %s1659_s3 }
 0x857   :  { %v446_v55 = vpop.permute.xlu1 %445 }
 0x858   :  { %v448_v56 = vadd.f32 %v446_v55, %v438_v54 }
 0x85a   :  { %1530 = vtanh.f32 %v448_v56  ;;  %v503_v18 = vrot.slane %v448_v56, 6 }
 0x860   :  { %v1531_v57 = vpop.eup %1530 }
 0x861   :  { %451 = vrot.lane.b32.xlu2 %v1531_v57, %s1658_s27 }
 0x8bb   :  { %v452_v58 = vpop.permute.xlu2 %451 }
 0x8bc   :  { %v454_v59 = vmul.f32 %v452_v58, %v432_v51 }
 0x8be   :  { %v456_v60 = vrot.slane %v454_v59, 6 }
 0x8c0   :  { %457 = vrot.lane.b32.xlu0 %v456_v60, %s1659_s3 }
 0x932   :  { %v458_v61 = vpop.permute.xlu0 %457 }
 0x933   :  { %1459 = vmatmul.msk.f32.vlgmr.msra.gmra.mxu2 %vm184_vm6, %v458_v61 }
 0x9b6   :  { %v478_v63 = vpop.f32.mrf.mxu2 }
 0x9b7   :  { %v481_v0 = vadd.f32 %v478_v63, %v1821_v62 }
 0x9b9   :  { %1532 = vtanh.f32 %v481_v0  ;;  %v1460_v2 = vmul.f32 -1.442695, %v481_v0 }
 0x9bb   :  { %1534 = vpow2.f32 %v1460_v2 }
 0x9bf   :  { %v1533_v1 = vpop.eup %1532 }
 0x9c0   :  { %507 = vrot.lane.b32.xlu1 %v1533_v1, %s1658_s27 }
 0x9c1   :  { %v1535_v3 = vpop.eup %1534 }
 0x9c2   :  { %v485_v4 = vadd.f32 1.0, %v1535_v3 }
 0x9c4   :  { %1536 = vrcp.f32 %v485_v4  ;;  %v497_v7 = vand.u32 2147483648, %v485_v4  ;;  %vm491_vm5 = vweird.f32 %v485_v4  ;;  %v495_v12 = vand.u32 2147483647, %v485_v4 }
 0x9c6   :  { %v498_v14 = vor.u32 1.1754944e-38, %v497_v7  ;;  %vm496_vm8 = vcmp.eq.f32.partialorder %v495_v12, 8.507059e+37 }
 0x9ca   :  { %v1537_v5 = vpop.eup %1536 }
 0x9cb   :  { %v487_v6 = vmul.f32 %v1537_v5, %v485_v4  ;;  %vm492_vm4 = vweird.f32 %v1537_v5 }
 0x9cc   :  { %vm493_vm7 = vmor %vm491_vm5, %vm492_vm4 }
 0x9cd   :  { %v488_v8 = vsub.f32 1.0, %v487_v6 }
 0x9cf   :  { %v489_v10 = vmul.f32 %v1537_v5, %v488_v8 }
 0x9d1   :  { %v490_v11 = vadd.f32 %v1537_v5, %v489_v10 }
 0x9d3   :  { %v494_v13 = vsel %vm493_vm7, %v1537_v5, %v490_v11 }
 0x9d4   :  { %v499_v16 = vsel %vm496_vm8, %v498_v14, %v494_v13 }
 0x9d5   :  { %v505_v19 = vmul.f32 %v503_v18, %v499_v16 }
 0xa32   :  { %v508_v15 = vpop.permute.xlu1 %507 }
 0xa33   :  { %v510_v17 = vmul.f32 %v508_v15, %v499_v16 }
 0xa35   :  { %512 = vrot.lane.b32.xlu2 %v510_v17, %s1659_s3 }
 0xa8f   :  { %v513_v20 = vpop.permute.xlu2 %512 }
 0xa90   :  { %v515_v21 = vadd.f32 %v513_v20, %v505_v19 }
 0xa92   :  { %1538 = vtanh.f32 %v515_v21  ;;  %v572_v46 = vrot.slane %v515_v21, 6 }
 0xa98   :  { %v1539_v22 = vpop.eup %1538 }
 0xa99   :  { %518 = vrot.lane.b32.xlu0 %v1539_v22, %s1658_s27 }
 0xb0b   :  { %v519_v23 = vpop.permute.xlu0 %518 }
 0xb0c   :  { %v521_v24 = vmul.f32 %v519_v23, %v499_v16 }
 0xb0e   :  { %523 = vrot.lane.b32.xlu1 %v521_v24, %s1659_s3 }
 0xb80   :  { %v524_v25 = vpop.permute.xlu1 %523 }
 0xb81   :  { %1461 = vmatmul.msk.f32.vlgmr.msra.gmra.mxu3 %vm184_vm6, %v524_v25 }
 0xc04   :  { %v544_v26 = vpop.f32.mrf.mxu3 }
 0xc05   :  { %v548_v27 = vrot.slane %v544_v26, 6 }
 0xc07   :  { %v550_v28 = vadd.f32 %v548_v27, %v1821_v62 }
 0xc09   :  { %1540 = vtanh.f32 %v550_v28  ;;  %v1462_v30 = vmul.f32 -1.442695, %v550_v28 }
 0xc0b   :  { %1542 = vpow2.f32 %v1462_v30 }
 0xc0f   :  { %v1541_v29 = vpop.eup %1540 }
 0xc10   :  { %576 = vrot.lane.b32.xlu2 %v1541_v29, %s1658_s27 }
 0xc11   :  { %v1543_v31 = vpop.eup %1542 }
 0xc12   :  { %v554_v32 = vadd.f32 1.0, %v1543_v31 }
 0xc14   :  { %1544 = vrcp.f32 %v554_v32  ;;  %v566_v39 = vand.u32 2147483648, %v554_v32  ;;  %vm560_vm10 = vweird.f32 %v554_v32  ;;  %v564_v40 = vand.u32 2147483647, %v554_v32 }
 0xc16   :  { %v567_v42 = vor.u32 1.1754944e-38, %v566_v39  ;;  %vm565_vm12 = vcmp.eq.f32.partialorder %v564_v40, 8.507059e+37 }
 0xc1a   :  { %v1545_v33 = vpop.eup %1544 }
 0xc1b   :  { %v556_v34 = vmul.f32 %v1545_v33, %v554_v32  ;;  %vm561_vm9 = vweird.f32 %v1545_v33 }
 0xc1c   :  { %vm562_vm11 = vmor %vm560_vm10, %vm561_vm9 }
 0xc1d   :  { %v557_v35 = vsub.f32 1.0, %v556_v34 }
 0xc1f   :  { %v558_v36 = vmul.f32 %v1545_v33, %v557_v35 }
 0xc21   :  { %v559_v38 = vadd.f32 %v1545_v33, %v558_v36 }
 0xc23   :  { %v563_v41 = vsel %vm562_vm11, %v1545_v33, %v559_v38 }
 0xc24   :  { %v568_v44 = vsel %vm565_vm12, %v567_v42, %v563_v41 }
 0xc25   :  { %v574_v47 = vmul.f32 %v572_v46, %v568_v44  ;;  %v1853_v46 = vld [vmem:[#allocation2 + $0x8] sm:$0xff] }
 0xc6a   :  { %v577_v43 = vpop.permute.xlu2 %576 }
 0xc6b   :  { %v579_v45 = vmul.f32 %v577_v43, %v568_v44 }
 0xc6d   :  { %581 = vrot.lane.b32.xlu0 %v579_v45, %s1659_s3  ;;  %v1850_v45 = vld [vmem:[#allocation2 + $0x10] sm:$0xff] }
 0xcdf   :  { %v582_v48 = vpop.permute.xlu0 %581 }
 0xce0   :  { %v584_v9 = vadd.f32 %v582_v48, %v574_v47  ;;  %v1856_v47 = vld [vmem:[#allocation2] sm:$0xff] }
 0xce2   :  { %1546 = vtanh.f32 %v584_v9  ;;  %v642_v7 = vrot.slane %v584_v9, 6 }
 0xce8   :  { %v1547_v49 = vpop.eup %1546 }
 0xce9   :  { %587 = vrot.lane.b32.xlu1 %v1547_v49, %s1658_s27 }
 0xd5b   :  { %v588_v50 = vpop.permute.xlu1 %587 }
 0xd5c   :  { %v590_v51 = vmul.f32 %v588_v50, %v568_v44  ;;  %v1848_v44 = vld [vmem:[#allocation2 + $0x18] sm:$0xff] }
 0xd5d   :  { %749 = vmatpush.msrb.mxu3 %v1848_v44 }
 0xd5e   :  { %v592_v52 = vrot.slane %v590_v51, 2  ;;  %v1499_v51 = vld [vmem:[%s2113_s6] ss:$0 sm:$0xff] }
 0xd5f   :  { %750 = vmatpush.msrb.mxu3 %v1850_v45 }
 0xd60   :  { %593 = vrot.lane.b32.xlu2 %v592_v52, %s1659_s3 }
 0xd61   :  { %751 = vmatpush.msrb.mxu3 %v1853_v46 }
 0xd63   :  { %752 = vmatpush.msrb.mxu3 %v1856_v47 }
 0xdba   :  { %v594_v53 = vpop.permute.xlu2 %593 }
 0xdbb   :  { %1463 = vmatmul.msk.f32.vlgmr.msra.gmra.mxu0 %vm184_vm6, %v594_v53 }
 0xe38   :  { %v614_v54 = vpop.f32.mrf.mxu0 }
 0xe39   :  { %v618_v55 = vrot.slane %v614_v54, 4 }
 0xe3b   :  { %v620_v56 = vadd.f32 %v618_v55, %v1821_v62 }
 0xe3d   :  { %1548 = vtanh.f32 %v620_v56  ;;  %v1464_v58 = vmul.f32 -1.442695, %v620_v56 }
 0xe3f   :  { %1550 = vpow2.f32 %v1464_v58  ;;  %v1869_v58 = vld [vmem:[%s2114_s7] sm:$0xff] }
 0xe40   :  { %1446 = vmatmul.msk.f32.vlgmr.msra.gmra.mxu1 %vm70_vm1, %v1869_v58 }
 0xe43   :  { %v1549_v57 = vpop.eup %1548 }
 0xe44   :  { %646 = vrot.lane.b32.xlu0 %v1549_v57, %s1658_s27 }
 0xe45   :  { %v1551_v59 = vpop.eup %1550 }
 0xe46   :  { %v624_v60 = vadd.f32 1.0, %v1551_v59 }
 0xe48   :  { %1552 = vrcp.f32 %v624_v60  ;;  %v636_v3 = vand.u32 2147483648, %v624_v60  ;;  %vm630_vm14 = vweird.f32 %v624_v60  ;;  %v634_v4 = vand.u32 2147483647, %v624_v60 }
 0xe4a   :  { %v637_v6 = vor.u32 1.1754944e-38, %v636_v3  ;;  %vm635_vm0 = vcmp.eq.f32.partialorder %v634_v4, 8.507059e+37 }
 0xe4e   :  { %v1553_v61 = vpop.eup %1552 }
 0xe4f   :  { %v626_v63 = vmul.f32 %v1553_v61, %v624_v60  ;;  %vm631_vm13 = vweird.f32 %v1553_v61 }
 0xe50   :  { %vm632_vm15 = vmor %vm630_vm14, %vm631_vm13 }
 0xe51   :  { %v627_v0 = vsub.f32 1.0, %v626_v63 }
 0xe53   :  { %v628_v1 = vmul.f32 %v1553_v61, %v627_v0 }
 0xe55   :  { %v629_v2 = vadd.f32 %v1553_v61, %v628_v1 }
 0xe57   :  { %v633_v5 = vsel %vm632_vm15, %v1553_v61, %v629_v2 }
 0xe58   :  { %v638_v10 = vsel %vm635_vm0, %v637_v6, %v633_v5 }
 0xe59   :  { %v644_v12 = vmul.f32 %v642_v7, %v638_v10  ;;  %v1889_v7 = vld [vmem:[%s2114_s7 + $0x18] sm:$0xff] }
 0xe5a   :  { %814 = vmatpush.msrb.mxu0 %v1889_v7  ;;  %902 = vmatpush.msra.mxu2 %v1889_v7 }
 0xeb6   :  { %v647_v8 = vpop.permute.xlu0 %646 }
 0xeb7   :  { %v649_v11 = vmul.f32 %v647_v8, %v638_v10 }
 0xeb9   :  { %651 = vrot.lane.b32.xlu1 %v649_v11, %s1659_s3  ;;  %v1884_v11 = vld [vmem:[%s2114_s7 + $0x10] sm:$0xff] }
 0xeba   :  { %815 = vmatpush.msrb.mxu0 %v1884_v11  ;;  %903 = vmatpush.msra.mxu2 %v1884_v11 }
 0xf2b   :  { %v652_v13 = vpop.permute.xlu1 %651 }
 0xf2c   :  { %v654_v14 = vadd.f32 %v652_v13, %v644_v12 }
 0xf2e   :  { %1554 = vtanh.f32 %v654_v14  ;;  %v712_v39 = vrot.slane %v654_v14, 6 }
 0xf34   :  { %v1555_v15 = vpop.eup %1554 }
 0xf35   :  { %657 = vrot.lane.b32.xlu2 %v1555_v15, %s1658_s27 }
 0xf8f   :  { %v658_v16 = vpop.permute.xlu2 %657 }
 0xf90   :  { %v660_v17 = vmul.f32 %v658_v16, %v638_v10  ;;  %v1877_v10 = vld [vmem:[%s2114_s7 + $0x8] sm:$0xff] }
 0xf91   :  { %1447 = vmatmul.msk.f32.gmra.mxu1 %vm70_vm1, %v1877_v10  ;;  %816 = vmatpush.msrb.mxu0 %v1877_v10 }
 0xf92   :  { %v662_v18 = vrot.slane %v660_v17, 4  ;;  %904 = vmatpush.msra.mxu2 %v1877_v10  ;;  %v136_v17 = vpop.f32.mrf.mxu1 }
 0xf93   :  { %817 = vmatpush.msrb.mxu0 %v1869_v58 }
 0xf94   :  { %663 = vrot.lane.b32.xlu0 %v662_v18, %s1659_s3  ;;  %905 = vmatpush.msra.mxu2 %v1869_v58 }
 0xf95   :  { %989 = vmatpush.msra.mxu0 %v1889_v7 }
 0xf97   :  { %990 = vmatpush.msra.mxu0 %v1884_v11 }
 0xf99   :  { %1448 = vmatmul.msk.f32.gmra.mxu1 %vm70_vm1, %v1884_v11  ;;  %991 = vmatpush.msra.mxu0 %v1877_v10 }
 0xf9b   :  { %992 = vmatpush.msra.mxu0 %v1869_v58 }
 0xfa1   :  { %1449 = vmatmul.msk.f32.gmra.mxu1 %vm70_vm1, %v1889_v7  ;;  %vm825_vm1 = vcmask 24576  }
0x1006   :  { %v664_v19 = vpop.permute.xlu0 %663 }
0x1007   :  { %1465 = vmatmul.msk.f32.vlgmr.msrb.gmra.mxu2 %vm184_vm6, %v664_v19 }
0x1008   :  { %1076 = vmatpush.msrb.mxu2 %v1889_v7 }
0x100a   :  { %1077 = vmatpush.msrb.mxu2 %v1884_v11 }
0x100c   :  { %1078 = vmatpush.msrb.mxu2 %v1877_v10 }
0x100e   :  { %1079 = vmatpush.msrb.mxu2 %v1869_v58  ;;  %v139_v18 = vpop.f32.mrf.mxu1 }
0x1016   :  { %v142_v19 = vpop.f32.mrf.mxu1 }
0x108a   :  { %v684_v20 = vpop.f32.mrf.mxu2 }
0x108b   :  { %v688_v21 = vrot.slane %v684_v20, 2  ;;  %v145_v20 = vpop.f32.mrf.mxu1 }
0x108d   :  { %v690_v22 = vadd.f32 %v688_v21, %v1821_v62  ;;  %v1917_v21 = vadd.f32 %v142_v19, %v1850_v45 }
0x108f   :  { %1556 = vtanh.f32 %v690_v22  ;;  %v1466_v24 = vmul.f32 -1.442695, %v690_v22  ;;  %v1920_v22 = vadd.f32 %v145_v20, %v1848_v44 }
0x1091   :  { %1558 = vpow2.f32 %v1466_v24  ;;  %840 = vmatpush.msrb.mxu1 %v1920_v22  ;;  %927 = vmatpush.msra.mxu3 %v1920_v22  ;;  %v1928_v24 = vadd.f32 %v136_v17, %v1856_v47 }
0x1093   :  { %841 = vmatpush.msrb.mxu1 %v1917_v21  ;;  %928 = vmatpush.msra.mxu3 %v1917_v21 }
0x1095   :  { %v1557_v23 = vpop.eup %1556 }
0x1096   :  { %716 = vrot.lane.b32.xlu1 %v1557_v23, %s1658_s27  ;;  %v1923_v23 = vadd.f32 %v139_v18, %v1853_v46 }
0x1097   :  { %v1559_v25 = vpop.eup %1558 }
0x1098   :  { %v694_v26 = vadd.f32 1.0, %v1559_v25  ;;  %842 = vmatpush.msrb.mxu1 %v1923_v23  ;;  %929 = vmatpush.msra.mxu3 %v1923_v23 }
0x109a   :  { %1560 = vrcp.f32 %v694_v26  ;;  %v706_v32 = vand.u32 2147483648, %v694_v26  ;;  %vm700_vm3 = vweird.f32 %v694_v26  ;;  %v704_v33 = vand.u32 2147483647, %v694_v26  ;;  %843 = vmatpush.msrb.mxu1 %v1928_v24  ;;  %930 = vmatpush.msra.mxu3 %v1928_v24 }
0x109c   :  { %v707_v34 = vor.u32 1.1754944e-38, %v706_v32  ;;  %vm705_vm5 = vcmp.eq.f32.partialorder %v704_v33, 8.507059e+37  ;;  %1014 = vmatpush.msra.mxu1 %v1920_v22 }
0x109e   :  { %1015 = vmatpush.msra.mxu1 %v1917_v21 }
0x10a0   :  { %v1561_v27 = vpop.eup %1560  ;;  %1016 = vmatpush.msra.mxu1 %v1923_v23 }
0x10a1   :  { %v696_v28 = vmul.f32 %v1561_v27, %v694_v26  ;;  %vm701_vm2 = vweird.f32 %v1561_v27 }
0x10a2   :  { %vm702_vm4 = vmor %vm700_vm3, %vm701_vm2  ;;  %1017 = vmatpush.msra.mxu1 %v1928_v24 }
0x10a3   :  { %v697_v29 = vsub.f32 1.0, %v696_v28  ;;  %v57_v28 = vld [vmem:[%s2113_s6] sm:$0x1] }
0x10a5   :  { %v698_v30 = vmul.f32 %v1561_v27, %v697_v29  ;;  %v175_v29 = vadd.f32 %v1796_v37, %v57_v28 }
0x10a7   :  { %v699_v31 = vadd.f32 %v1561_v27, %v698_v30  ;;  %v1962_v30 = vld [vmem:[%s2115_s8] ss:$0 sm:$0xff] }
0x10a9   :  { %v703_v62 = vsel %vm702_vm4, %v1561_v27, %v699_v31  ;;  %v1964_v31 = vperm.slane %v175_v29, 0 }
0x10aa   :  { %v708_v36 = vsel %vm705_vm5, %v707_v34, %v703_v62 }
0x10ab   :  { %v714_v40 = vmul.f32 %v712_v39, %v708_v36 }
0x1108   :  { %v717_v35 = vpop.permute.xlu1 %716 }
0x1109   :  { %v719_v38 = vmul.f32 %v717_v35, %v708_v36 }
0x110b   :  { %721 = vrot.lane.b32.xlu2 %v719_v38, %s1659_s3 }
0x1165   :  { %v722_v41 = vpop.permute.xlu2 %721 }
0x1166   :  { %v1844_v42 = vadd.f32 %v722_v41, %v714_v40 }
0x1168   :  { %1562 = vtanh.f32 %v1844_v42  ;;  %v778_v12 = vrot.slane %v1844_v42, 6 }
0x116e   :  { %v1563_v43 = vpop.eup %1562 }
0x116f   :  { %727 = vrot.lane.b32.xlu0 %v1563_v43, %s1658_s27 }
0x11e1   :  { %v728_v48 = vpop.permute.xlu0 %727 }
0x11e2   :  { %v730_v9 = vmul.f32 %v728_v48, %v708_v36 }
0x11e4   :  { %v732_v49 = vrot.slane %v730_v9, 6 }
0x11e6   :  { %733 = vrot.lane.b32.xlu1 %v732_v49, %s1659_s3 }
0x1258   :  { %v734_v50 = vpop.permute.xlu1 %733 }
0x1259   :  { %1467 = vmatmul.msk.f32.vlgmr.msrb.gmra.mxu3 %vm184_vm6, %v734_v50 }
0x125a   :  { %1101 = vmatpush.msrb.mxu3 %v1920_v22 }
0x125c   :  { %1102 = vmatpush.msrb.mxu3 %v1917_v21 }
0x125e   :  { %1103 = vmatpush.msrb.mxu3 %v1923_v23 }
0x1260   :  { %1104 = vmatpush.msrb.mxu3 %v1928_v24 }
0x12dc   :  { %v754_v52 = vpop.f32.mrf.mxu3 }
0x12dd   :  { %v755_v53 = vadd.f32 %v1499_v51, %v754_v52 }
0x12df   :  { %1564 = vtanh.f32 %v755_v53  ;;  %v1468_v55 = vmul.f32 -1.442695, %v755_v53 }
0x12e1   :  { %1566 = vpow2.f32 %v1468_v55 }
0x12e5   :  { %v1565_v54 = vpop.eup %1564 }
0x12e6   :  { %782 = vrot.lane.b32.xlu2 %v1565_v54, %s1658_s27 }
0x12e7   :  { %v1567_v56 = vpop.eup %1566 }
0x12e8   :  { %v760_v57 = vadd.f32 1.0, %v1567_v56 }
0x12ea   :  { %1568 = vrcp.f32 %v760_v57  ;;  %v772_v1 = vand.u32 2147483648, %v760_v57  ;;  %vm766_vm8 = vweird.f32 %v760_v57  ;;  %v770_v2 = vand.u32 2147483647, %v760_v57 }
0x12ec   :  { %v773_v4 = vor.u32 1.1754944e-38, %v772_v1  ;;  %vm771_vm10 = vcmp.eq.f32.partialorder %v770_v2, 8.507059e+37 }
0x12f0   :  { %v1569_v59 = vpop.eup %1568 }
0x12f1   :  { %v762_v60 = vmul.f32 %v1569_v59, %v760_v57  ;;  %vm767_vm7 = vweird.f32 %v1569_v59 }
0x12f2   :  { %vm768_vm9 = vmor %vm766_vm8, %vm767_vm7 }
0x12f3   :  { %v763_v61 = vsub.f32 1.0, %v762_v60 }
0x12f5   :  { %v764_v63 = vmul.f32 %v1569_v59, %v763_v61 }
0x12f7   :  { %v765_v0 = vadd.f32 %v1569_v59, %v764_v63 }
0x12f9   :  { %v769_v3 = vsel %vm768_vm9, %v1569_v59, %v765_v0 }
0x12fa   :  { %v774_v6 = vsel %vm771_vm10, %v773_v4, %v769_v3 }
0x12fb   :  { %v780_v13 = vmul.f32 %v778_v12, %v774_v6 }
0x1340   :  { %v783_v5 = vpop.permute.xlu2 %782 }
0x1341   :  { %v785_v8 = vmul.f32 %v783_v5, %v774_v6 }
0x1343   :  { %787 = vrot.lane.b32.xlu0 %v785_v8, %s1659_s3 }
0x13b5   :  { %v788_v14 = vpop.permute.xlu0 %787 }
0x13b6   :  { %v1912_v15 = vadd.f32 %v788_v14, %v780_v13 }
0x13b8   :  { %1570 = vtanh.f32 %v1912_v15 }
0x13be   :  { %v1571_v16 = vpop.eup %1570 }
0x13bf   :  { %793 = vrot.lane.b32.xlu1 %v1571_v16, %s1658_s27 }
0x1431   :  { %v794_v25 = vpop.permute.xlu1 %793 }
0x1432   :  { %v796_v26 = vmul.f32 %v794_v25, %v774_v6 }
0x1434   :  { %798 = vrot.lane.b32.xlu2 %v796_v26, %s1659_s3 }
0x148e   :  { %v799_v27 = vpop.permute.xlu2 %798 }
0x148f   :  { %1469 = vmatmul.msk.f32.vlgmr.msrb.gmra.mxu0 %vm184_vm6, %v799_v27  ;;  %1470 = vmatmul.msk.f32.vlgmr.msrb.gmra.mxu1 %vm184_vm6, %v799_v27 }
0x1490   :  { %1188 = vmatpush.msrb.mxu1 %v1920_v22  ;;  %1163 = vmatpush.msrb.mxu0 %v1889_v7 }
0x1492   :  { %1189 = vmatpush.msrb.mxu1 %v1917_v21  ;;  %1164 = vmatpush.msrb.mxu0 %v1884_v11 }
0x1494   :  { %1190 = vmatpush.msrb.mxu1 %v1923_v23  ;;  %1165 = vmatpush.msrb.mxu0 %v1877_v10 }
0x1496   :  { %1191 = vmatpush.msrb.mxu1 %v1928_v24  ;;  %1166 = vmatpush.msrb.mxu0 %v1869_v58 }
0x150c   :  { %v819_v32 = vpop.f32.mrf.mxu0  ;;  %v845_v33 = vpop.f32.mrf.mxu1 }
0x150d   :  { %v820_v62 = vadd.f32 %v1962_v30, %v819_v32  ;;  %v846_v34 = vadd.f32 %v845_v33, %v1964_v31 }
0x150f   :  { %v823_v35 = vrot.slane %v820_v62, 1  ;;  %826 = vst.msk [vmem:[%s2116_s9] sm:$0x1] %vm825_vm1, %v820_v62  ;;  %1572 = vtanh.f32 %v846_v34  ;;  %v1471_v36 = vmul.f32 -1.442695, %v846_v34 }
0x1511   :  { %827 = vst.msk [vmem:[%s2116_s9 + $0x8] sm:$0x1] %vm825_vm1, %v823_v35  ;;  %1574 = vpow2.f32 %v1471_v36 }
0x1515   :  { %v1573_v37 = vpop.eup %1572 }
0x1516   :  { %870 = vrot.lane.b32.xlu0 %v1573_v37, %s1658_s27 }
0x1517   :  { %v1575_v38 = vpop.eup %1574 }
0x1518   :  { %v851_v39 = vadd.f32 1.0, %v1575_v38 }
0x151a   :  { %1576 = vrcp.f32 %v851_v39  ;;  %v863_v45 = vand.u32 2147483648, %v851_v39  ;;  %vm857_vm12 = vweird.f32 %v851_v39  ;;  %v861_v46 = vand.u32 2147483647, %v851_v39 }
0x151c   :  { %v864_v48 = vor.u32 1.1754944e-38, %v863_v45  ;;  %vm862_vm14 = vcmp.eq.f32.partialorder %v861_v46, 8.507059e+37 }
0x1520   :  { %v1577_v40 = vpop.eup %1576 }
0x1521   :  { %v853_v41 = vmul.f32 %v1577_v40, %v851_v39  ;;  %vm858_vm11 = vweird.f32 %v1577_v40 }
0x1522   :  { %vm859_vm13 = vmor %vm857_vm12, %vm858_vm11 }
0x1523   :  { %v854_v42 = vsub.f32 1.0, %v853_v41 }
0x1525   :  { %v855_v43 = vmul.f32 %v1577_v40, %v854_v42 }
0x1527   :  { %v856_v44 = vadd.f32 %v1577_v40, %v855_v43 }
0x1529   :  { %v860_v47 = vsel %vm859_vm13, %v1577_v40, %v856_v44 }
0x152a   :  { %v865_v49 = vsel %vm862_vm14, %v864_v48, %v860_v47 }
0x152b   :  { %v868_v51 = vmul.f32 %v865_v49, %v1912_v15 }
0x1588   :  { %v871_v9 = vpop.permute.xlu0 %870 }
0x1589   :  { %v873_v50 = vmul.f32 %v871_v9, %v865_v49 }
0x158b   :  { %875 = vrot.lane.b32.xlu1 %v873_v50, %s1659_s3 }
0x15fd   :  { %v876_v52 = vpop.permute.xlu1 %875 }
0x15fe   :  { %v878_v53 = vadd.f32 %v876_v52, %v868_v51 }
0x1600   :  { %1578 = vtanh.f32 %v878_v53 }
0x1606   :  { %v1579_v54 = vpop.eup %1578 }
0x1607   :  { %881 = vrot.lane.b32.xlu2 %v1579_v54, %s1658_s27 }
0x1661   :  { %v882_v55 = vpop.permute.xlu2 %881 }
0x1662   :  { %v884_v56 = vmul.f32 %v882_v55, %v865_v49 }
0x1664   :  { %886 = vrot.lane.b32.xlu0 %v884_v56, %s1659_s3 }
0x16d6   :  { %v887_v57 = vpop.permute.xlu0 %886 }
0x16d7   :  { %1472 = vmatmul.msk.f32.vlgmr.msra.gmra.mxu2 %vm184_vm6, %v887_v57  ;;  %1473 = vmatmul.msk.f32.vlgmr.msra.gmra.mxu3 %vm184_vm6, %v887_v57 }
0x16d8   :  { %1275 = vmatpush.msra.mxu3 %v1920_v22  ;;  %1250 = vmatpush.msra.mxu2 %v1889_v7 }
0x16da   :  { %1276 = vmatpush.msra.mxu3 %v1917_v21  ;;  %1251 = vmatpush.msra.mxu2 %v1884_v11 }
0x16dc   :  { %1277 = vmatpush.msra.mxu3 %v1923_v23  ;;  %1252 = vmatpush.msra.mxu2 %v1877_v10 }
0x16de   :  { %1278 = vmatpush.msra.mxu3 %v1928_v24  ;;  %1253 = vmatpush.msra.mxu2 %v1869_v58 }
0x175a   :  { %v907_v59 = vpop.f32.mrf.mxu2  ;;  %v932_v60 = vpop.f32.mrf.mxu3 }
0x175b   :  { %v908_v61 = vadd.f32 %v1962_v30, %v907_v59  ;;  %v933_v63 = vadd.f32 %v932_v60, %v1964_v31 }
0x175d   :  { %v911_v0 = vrot.slane %v908_v61, 1  ;;  %913 = vst.msk [vmem:[%s2116_s9 + $0x1] sm:$0x1] %vm825_vm1, %v908_v61  ;;  %1580 = vtanh.f32 %v933_v63  ;;  %v1474_v2 = vmul.f32 -1.442695, %v933_v63 }
0x175f   :  { %914 = vst.msk [vmem:[%s2116_s9 + $0x9] sm:$0x1] %vm825_vm1, %v911_v0  ;;  %1582 = vpow2.f32 %v1474_v2 }
0x1763   :  { %v1581_v1 = vpop.eup %1580 }
0x1764   :  { %957 = vrot.lane.b32.xlu1 %v1581_v1, %s1658_s27 }
0x1765   :  { %v1583_v3 = vpop.eup %1582 }
0x1766   :  { %v938_v4 = vadd.f32 1.0, %v1583_v3 }
0x1768   :  { %1584 = vrcp.f32 %v938_v4  ;;  %v950_v14 = vand.u32 2147483648, %v938_v4  ;;  %vm944_vm0 = vweird.f32 %v938_v4  ;;  %v948_v15 = vand.u32 2147483647, %v938_v4 }
0x176a   :  { %v951_v17 = vor.u32 1.1754944e-38, %v950_v14  ;;  %vm949_vm3 = vcmp.eq.f32.partialorder %v948_v15, 8.507059e+37 }
0x176e   :  { %v1585_v5 = vpop.eup %1584 }
0x176f   :  { %v940_v6 = vmul.f32 %v1585_v5, %v938_v4  ;;  %vm945_vm15 = vweird.f32 %v1585_v5 }
0x1770   :  { %vm946_vm2 = vmor %vm944_vm0, %vm945_vm15 }
0x1771   :  { %v941_v8 = vsub.f32 1.0, %v940_v6 }
0x1773   :  { %v942_v12 = vmul.f32 %v1585_v5, %v941_v8 }
0x1775   :  { %v943_v13 = vadd.f32 %v1585_v5, %v942_v12 }
0x1777   :  { %v947_v16 = vsel %vm946_vm2, %v1585_v5, %v943_v13 }
0x1778   :  { %v952_v19 = vsel %vm949_vm3, %v951_v17, %v947_v16 }
0x1779   :  { %v955_v25 = vmul.f32 %v952_v19, %v878_v53 }
0x17d6   :  { %v958_v18 = vpop.permute.xlu1 %957 }
0x17d7   :  { %v960_v20 = vmul.f32 %v958_v18, %v952_v19 }
0x17d9   :  { %962 = vrot.lane.b32.xlu2 %v960_v20, %s1659_s3 }
0x1833   :  { %v963_v26 = vpop.permute.xlu2 %962 }
0x1834   :  { %v965_v27 = vadd.f32 %v963_v26, %v955_v25 }
0x1836   :  { %1586 = vtanh.f32 %v965_v27 }
0x183c   :  { %v1587_v28 = vpop.eup %1586 }
0x183d   :  { %968 = vrot.lane.b32.xlu0 %v1587_v28, %s1658_s27 }
0x18af   :  { %v969_v29 = vpop.permute.xlu0 %968 }
0x18b0   :  { %v971_v32 = vmul.f32 %v969_v29, %v952_v19 }
0x18b2   :  { %973 = vrot.lane.b32.xlu1 %v971_v32, %s1659_s3 }
0x1924   :  { %v974_v33 = vpop.permute.xlu1 %973 }
0x1925   :  { %1475 = vmatmul.msk.f32.vlgmr.msra.gmra.mxu0 %vm184_vm6, %v974_v33  ;;  %1476 = vmatmul.msk.f32.vlgmr.msra.gmra.mxu1 %vm184_vm6, %v974_v33 }
0x1926   :  { %1362 = vmatpush.msra.mxu1 %v1920_v22  ;;  %1337 = vmatpush.msra.mxu0 %v1889_v7 }
0x1928   :  { %1363 = vmatpush.msra.mxu1 %v1917_v21  ;;  %1338 = vmatpush.msra.mxu0 %v1884_v11 }
0x192a   :  { %1364 = vmatpush.msra.mxu1 %v1923_v23  ;;  %1339 = vmatpush.msra.mxu0 %v1877_v10 }
0x192c   :  { %1365 = vmatpush.msra.mxu1 %v1928_v24  ;;  %1340 = vmatpush.msra.mxu0 %v1869_v58 }
0x19a2   :  { %v994_v62 = vpop.f32.mrf.mxu0  ;;  %v1019_v34 = vpop.f32.mrf.mxu1 }
0x19a3   :  { %v995_v35 = vadd.f32 %v1962_v30, %v994_v62  ;;  %v1020_v22 = vadd.f32 %v1019_v34, %v1964_v31 }
0x19a5   :  { %v998_v37 = vrot.slane %v995_v35, 1  ;;  %1000 = vst.msk [vmem:[%s2116_s9 + $0x2] sm:$0x1] %vm825_vm1, %v995_v35  ;;  %1588 = vtanh.f32 %v1020_v22  ;;  %v1477_v23 = vmul.f32 -1.442695, %v1020_v22 }
0x19a7   :  { %1001 = vst.msk [vmem:[%s2116_s9 + $0xa] sm:$0x1] %vm825_vm1, %v998_v37  ;;  %1590 = vpow2.f32 %v1477_v23 }
0x19ab   :  { %v1589_v21 = vpop.eup %1588 }
0x19ac   :  { %1044 = vrot.lane.b32.xlu2 %v1589_v21, %s1658_s27 }
0x19ad   :  { %v1591_v24 = vpop.eup %1590 }
0x19ae   :  { %v1025_v36 = vadd.f32 1.0, %v1591_v24 }
0x19b0   :  { %1592 = vrcp.f32 %v1025_v36  ;;  %v1037_v43 = vand.u32 2147483648, %v1025_v36  ;;  %vm1031_vm5 = vweird.f32 %v1025_v36  ;;  %v1035_v44 = vand.u32 2147483647, %v1025_v36 }
0x19b2   :  { %v1038_v46 = vor.u32 1.1754944e-38, %v1037_v43  ;;  %vm1036_vm8 = vcmp.eq.f32.partialorder %v1035_v44, 8.507059e+37 }
0x19b6   :  { %v1593_v38 = vpop.eup %1592 }
0x19b7   :  { %v1027_v39 = vmul.f32 %v1593_v38, %v1025_v36  ;;  %vm1032_vm4 = vweird.f32 %v1593_v38 }
0x19b8   :  { %vm1033_vm7 = vmor %vm1031_vm5, %vm1032_vm4 }
0x19b9   :  { %v1028_v40 = vsub.f32 1.0, %v1027_v39 }
0x19bb   :  { %v1029_v41 = vmul.f32 %v1593_v38, %v1028_v40 }
0x19bd   :  { %v1030_v42 = vadd.f32 %v1593_v38, %v1029_v41 }
0x19bf   :  { %v1034_v45 = vsel %vm1033_vm7, %v1593_v38, %v1030_v42 }
0x19c0   :  { %v1039_v48 = vsel %vm1036_vm8, %v1038_v46, %v1034_v45 }
0x19c1   :  { %v1042_v49 = vmul.f32 %v1039_v48, %v965_v27 }
0x1a06   :  { %v1045_v47 = vpop.permute.xlu2 %1044 }
0x1a07   :  { %v1047_v9 = vmul.f32 %v1045_v47, %v1039_v48 }
0x1a09   :  { %1049 = vrot.lane.b32.xlu0 %v1047_v9, %s1659_s3 }
0x1a7b   :  { %v1050_v50 = vpop.permute.xlu0 %1049 }
0x1a7c   :  { %v1052_v51 = vadd.f32 %v1050_v50, %v1042_v49 }
0x1a7e   :  { %1594 = vtanh.f32 %v1052_v51 }
0x1a84   :  { %v1595_v52 = vpop.eup %1594 }
0x1a85   :  { %1055 = vrot.lane.b32.xlu1 %v1595_v52, %s1658_s27 }
0x1af7   :  { %v1056_v53 = vpop.permute.xlu1 %1055 }
0x1af8   :  { %v1058_v54 = vmul.f32 %v1056_v53, %v1039_v48 }
0x1afa   :  { %1060 = vrot.lane.b32.xlu2 %v1058_v54, %s1659_s3 }
0x1b54   :  { %v1061_v55 = vpop.permute.xlu2 %1060 }
0x1b55   :  { %1478 = vmatmul.msk.f32.vlgmr.msrb.gmra.mxu2 %vm184_vm6, %v1061_v55  ;;  %1479 = vmatmul.msk.f32.vlgmr.msrb.gmra.mxu3 %vm184_vm6, %v1061_v55 }
0x1b56   :  { %1424 = vmatpush.msrb.mxu2 %v1889_v7 }
0x1b58   :  { %1425 = vmatpush.msrb.mxu2 %v1884_v11 }
0x1b5a   :  { %1426 = vmatpush.msrb.mxu2 %v1877_v10 }
0x1b5c   :  { %1427 = vmatpush.msrb.mxu2 %v1869_v58 }
0x1bd8   :  { %v1081_v56 = vpop.f32.mrf.mxu2  ;;  %v1106_v57 = vpop.f32.mrf.mxu3 }
0x1bd9   :  { %v1082_v59 = vadd.f32 %v1962_v30, %v1081_v56  ;;  %v1107_v60 = vadd.f32 %v1106_v57, %v1964_v31 }
0x1bdb   :  { %v1085_v61 = vrot.slane %v1082_v59, 1  ;;  %1087 = vst.msk [vmem:[%s2116_s9 + $0x3] sm:$0x1] %vm825_vm1, %v1082_v59  ;;  %1596 = vtanh.f32 %v1107_v60  ;;  %v1480_v58 = vmul.f32 -1.442695, %v1107_v60 }
0x1bdd   :  { %1088 = vst.msk [vmem:[%s2116_s9 + $0xb] sm:$0x1] %vm825_vm1, %v1085_v61  ;;  %1598 = vpow2.f32 %v1480_v58 }
0x1be1   :  { %v1597_v10 = vpop.eup %1596 }
0x1be2   :  { %1131 = vrot.lane.b32.xlu0 %v1597_v10, %s1658_s27 }
0x1be3   :  { %v1599_v11 = vpop.eup %1598 }
0x1be4   :  { %v1112_v7 = vadd.f32 1.0, %v1599_v11 }
0x1be6   :  { %1600 = vrcp.f32 %v1112_v7  ;;  %v1124_v4 = vand.u32 2147483648, %v1112_v7  ;;  %vm1118_vm10 = vweird.f32 %v1112_v7  ;;  %v1122_v5 = vand.u32 2147483647, %v1112_v7 }
0x1be8   :  { %v1125_v8 = vor.u32 1.1754944e-38, %v1124_v4  ;;  %vm1123_vm12 = vcmp.eq.f32.partialorder %v1122_v5, 8.507059e+37 }
0x1bec   :  { %v1601_v63 = vpop.eup %1600 }
0x1bed   :  { %v1114_v0 = vmul.f32 %v1601_v63, %v1112_v7  ;;  %vm1119_vm9 = vweird.f32 %v1601_v63 }
0x1bee   :  { %vm1120_vm11 = vmor %vm1118_vm10, %vm1119_vm9 }
0x1bef   :  { %v1115_v1 = vsub.f32 1.0, %v1114_v0 }
0x1bf1   :  { %v1116_v2 = vmul.f32 %v1601_v63, %v1115_v1 }
0x1bf3   :  { %v1117_v3 = vadd.f32 %v1601_v63, %v1116_v2 }
0x1bf5   :  { %v1121_v6 = vsel %vm1120_vm11, %v1601_v63, %v1117_v3 }
0x1bf6   :  { %v1126_v13 = vsel %vm1123_vm12, %v1125_v8, %v1121_v6 }
0x1bf7   :  { %v1129_v15 = vmul.f32 %v1126_v13, %v1052_v51 }
0x1c54   :  { %v1132_v12 = vpop.permute.xlu0 %1131 }
0x1c55   :  { %v1134_v14 = vmul.f32 %v1132_v12, %v1126_v13 }
0x1c57   :  { %1136 = vrot.lane.b32.xlu1 %v1134_v14, %s1659_s3 }
0x1cc9   :  { %v1137_v16 = vpop.permute.xlu1 %1136 }
0x1cca   :  { %v1139_v17 = vadd.f32 %v1137_v16, %v1129_v15 }
0x1ccc   :  { %1602 = vtanh.f32 %v1139_v17 }
0x1cd2   :  { %v1603_v18 = vpop.eup %1602 }
0x1cd3   :  { %1142 = vrot.lane.b32.xlu2 %v1603_v18, %s1658_s27 }
0x1d2d   :  { %v1143_v19 = vpop.permute.xlu2 %1142 }
0x1d2e   :  { %v1145_v20 = vmul.f32 %v1143_v19, %v1126_v13 }
0x1d30   :  { %1147 = vrot.lane.b32.xlu0 %v1145_v20, %s1659_s3 }
0x1da2   :  { %v1148_v25 = vpop.permute.xlu0 %1147 }
0x1da3   :  { %1481 = vmatmul.msk.f32.vlgmr.msrb.gmra.mxu0 %vm184_vm6, %v1148_v25  ;;  %1482 = vmatmul.msk.f32.vlgmr.msrb.gmra.mxu1 %vm184_vm6, %v1148_v25 }
0x1e20   :  { %v1168_v26 = vpop.f32.mrf.mxu0  ;;  %v1193_v27 = vpop.f32.mrf.mxu1 }
0x1e21   :  { %v1169_v28 = vadd.f32 %v1962_v30, %v1168_v26  ;;  %v1194_v29 = vadd.f32 %v1193_v27, %v1964_v31 }
0x1e23   :  { %v1172_v32 = vrot.slane %v1169_v28, 1  ;;  %1174 = vst.msk [vmem:[%s2116_s9 + $0x4] sm:$0x1] %vm825_vm1, %v1169_v28  ;;  %1604 = vtanh.f32 %v1194_v29  ;;  %v1483_v62 = vmul.f32 -1.442695, %v1194_v29 }
0x1e25   :  { %1175 = vst.msk [vmem:[%s2116_s9 + $0xc] sm:$0x1] %vm825_vm1, %v1172_v32  ;;  %1606 = vpow2.f32 %v1483_v62 }
0x1e29   :  { %v1605_v33 = vpop.eup %1604 }
0x1e2a   :  { %1218 = vrot.lane.b32.xlu1 %v1605_v33, %s1658_s27 }
0x1e2b   :  { %v1607_v34 = vpop.eup %1606 }
0x1e2c   :  { %v1199_v35 = vadd.f32 1.0, %v1607_v34 }
0x1e2e   :  { %1608 = vrcp.f32 %v1199_v35  ;;  %v1211_v36 = vand.u32 2147483648, %v1199_v35  ;;  %vm1205_vm14 = vweird.f32 %v1199_v35  ;;  %v1209_v38 = vand.u32 2147483647, %v1199_v35 }
0x1e30   :  { %v1212_v40 = vor.u32 1.1754944e-38, %v1211_v36  ;;  %vm1210_vm0 = vcmp.eq.f32.partialorder %v1209_v38, 8.507059e+37 }
0x1e34   :  { %v1609_v22 = vpop.eup %1608 }
0x1e35   :  { %v1201_v37 = vmul.f32 %v1609_v22, %v1199_v35  ;;  %vm1206_vm13 = vweird.f32 %v1609_v22 }
0x1e36   :  { %vm1207_vm15 = vmor %vm1205_vm14, %vm1206_vm13 }
0x1e37   :  { %v1202_v21 = vsub.f32 1.0, %v1201_v37 }
0x1e39   :  { %v1203_v23 = vmul.f32 %v1609_v22, %v1202_v21 }
0x1e3b   :  { %v1204_v24 = vadd.f32 %v1609_v22, %v1203_v23 }
0x1e3d   :  { %v1208_v39 = vsel %vm1207_vm15, %v1609_v22, %v1204_v24 }
0x1e3e   :  { %v1213_v42 = vsel %vm1210_vm0, %v1212_v40, %v1208_v39 }
0x1e3f   :  { %v1216_v44 = vmul.f32 %v1213_v42, %v1139_v17 }
0x1e9c   :  { %v1219_v41 = vpop.permute.xlu1 %1218 }
0x1e9d   :  { %v1221_v43 = vmul.f32 %v1219_v41, %v1213_v42 }
0x1e9f   :  { %1223 = vrot.lane.b32.xlu2 %v1221_v43, %s1659_s3 }
0x1ef9   :  { %v1224_v45 = vpop.permute.xlu2 %1223 }
0x1efa   :  { %v1226_v46 = vadd.f32 %v1224_v45, %v1216_v44 }
0x1efc   :  { %1610 = vtanh.f32 %v1226_v46 }
0x1f02   :  { %v1611_v47 = vpop.eup %1610 }
0x1f03   :  { %1229 = vrot.lane.b32.xlu0 %v1611_v47, %s1658_s27 }
0x1f75   :  { %v1230_v48 = vpop.permute.xlu0 %1229 }
0x1f76   :  { %v1232_v9 = vmul.f32 %v1230_v48, %v1213_v42 }
0x1f78   :  { %1234 = vrot.lane.b32.xlu1 %v1232_v9, %s1659_s3 }
0x1fea   :  { %v1235_v49 = vpop.permute.xlu1 %1234 }
0x1feb   :  { %1484 = vmatmul.msk.f32.vlgmr.msra.gmra.mxu2 %vm184_vm6, %v1235_v49  ;;  %1485 = vmatmul.msk.f32.vlgmr.msra.gmra.mxu3 %vm184_vm6, %v1235_v49 }
0x206e   :  { %v1255_v50 = vpop.f32.mrf.mxu2  ;;  %v1280_v51 = vpop.f32.mrf.mxu3 }
0x206f   :  { %v1256_v52 = vadd.f32 %v1962_v30, %v1255_v50  ;;  %v1281_v53 = vadd.f32 %v1280_v51, %v1964_v31 }
0x2071   :  { %v1259_v54 = vrot.slane %v1256_v52, 1  ;;  %1261 = vst.msk [vmem:[%s2116_s9 + $0x5] sm:$0x1] %vm825_vm1, %v1256_v52  ;;  %1612 = vtanh.f32 %v1281_v53  ;;  %v1486_v56 = vmul.f32 -1.442695, %v1281_v53 }
0x2073   :  { %1262 = vst.msk [vmem:[%s2116_s9 + $0xd] sm:$0x1] %vm825_vm1, %v1259_v54  ;;  %1614 = vpow2.f32 %v1486_v56 }
0x2077   :  { %v1613_v55 = vpop.eup %1612 }
0x2078   :  { %1305 = vrot.lane.b32.xlu2 %v1613_v55, %s1658_s27 }
0x2079   :  { %v1615_v57 = vpop.eup %1614 }
0x207a   :  { %v1286_v59 = vadd.f32 1.0, %v1615_v57 }
0x207c   :  { %1616 = vrcp.f32 %v1286_v59  ;;  %v1298_v7 = vand.u32 2147483648, %v1286_v59  ;;  %vm1292_vm3 = vweird.f32 %v1286_v59  ;;  %v1296_v63 = vand.u32 2147483647, %v1286_v59 }
0x207e   :  { %v1299_v1 = vor.u32 1.1754944e-38, %v1298_v7  ;;  %vm1297_vm5 = vcmp.eq.f32.partialorder %v1296_v63, 8.507059e+37 }
0x2082   :  { %v1617_v60 = vpop.eup %1616 }
0x2083   :  { %v1288_v61 = vmul.f32 %v1617_v60, %v1286_v59  ;;  %vm1293_vm2 = vweird.f32 %v1617_v60 }
0x2084   :  { %vm1294_vm4 = vmor %vm1292_vm3, %vm1293_vm2 }
0x2085   :  { %v1289_v10 = vsub.f32 1.0, %v1288_v61 }
0x2087   :  { %v1290_v58 = vmul.f32 %v1617_v60, %v1289_v10 }
0x2089   :  { %v1291_v11 = vadd.f32 %v1617_v60, %v1290_v58 }
0x208b   :  { %v1295_v0 = vsel %vm1294_vm4, %v1617_v60, %v1291_v11 }
0x208c   :  { %v1300_v3 = vsel %vm1297_vm5, %v1299_v1, %v1295_v0 }
0x208d   :  { %v1303_v5 = vmul.f32 %v1300_v3, %v1226_v46 }
0x20d2   :  { %v1306_v2 = vpop.permute.xlu2 %1305 }
0x20d3   :  { %v1308_v4 = vmul.f32 %v1306_v2, %v1300_v3 }
0x20d5   :  { %1310 = vrot.lane.b32.xlu0 %v1308_v4, %s1659_s3 }
0x2147   :  { %v1311_v6 = vpop.permute.xlu0 %1310 }
0x2148   :  { %v1313_v8 = vadd.f32 %v1311_v6, %v1303_v5 }
0x214a   :  { %1618 = vtanh.f32 %v1313_v8 }
0x2150   :  { %v1619_v12 = vpop.eup %1618 }
0x2151   :  { %1316 = vrot.lane.b32.xlu1 %v1619_v12, %s1658_s27 }
0x21c3   :  { %v1317_v13 = vpop.permute.xlu1 %1316 }
0x21c4   :  { %v1319_v14 = vmul.f32 %v1317_v13, %v1300_v3 }
0x21c6   :  { %1321 = vrot.lane.b32.xlu2 %v1319_v14, %s1659_s3 }
0x2220   :  { %v1322_v15 = vpop.permute.xlu2 %1321 }
0x2221   :  { %1487 = vmatmul.msk.f32.vlgmr.msra.gmra.mxu0 %vm184_vm6, %v1322_v15  ;;  %1488 = vmatmul.msk.f32.vlgmr.msra.gmra.mxu1 %vm184_vm6, %v1322_v15 }
0x229e   :  { %v1342_v16 = vpop.f32.mrf.mxu0  ;;  %v1367_v17 = vpop.f32.mrf.mxu1 }
0x229f   :  { %v1343_v18 = vadd.f32 %v1962_v30, %v1342_v16  ;;  %v1368_v19 = vadd.f32 %v1367_v17, %v1964_v31 }
0x22a1   :  { %v1346_v20 = vrot.slane %v1343_v18, 1  ;;  %1348 = vst.msk [vmem:[%s2116_s9 + $0x6] sm:$0x1] %vm825_vm1, %v1343_v18  ;;  %1620 = vtanh.f32 %v1368_v19  ;;  %v1489_v26 = vmul.f32 -1.442695, %v1368_v19 }
0x22a3   :  { %1349 = vst.msk [vmem:[%s2116_s9 + $0xe] sm:$0x1] %vm825_vm1, %v1346_v20  ;;  %1622 = vpow2.f32 %v1489_v26 }
0x22a7   :  { %v1621_v25 = vpop.eup %1620 }
0x22a8   :  { %1392 = vrot.lane.b32.xlu0 %v1621_v25, %s1658_s27 }
0x22a9   :  { %v1623_v27 = vpop.eup %1622 }
0x22aa   :  { %v1373_v28 = vadd.f32 1.0, %v1623_v27 }
0x22ac   :  { %1624 = vrcp.f32 %v1373_v28  ;;  %v1385_v34 = vand.u32 2147483648, %v1373_v28  ;;  %vm1379_vm8 = vweird.f32 %v1373_v28  ;;  %v1383_v35 = vand.u32 2147483647, %v1373_v28 }
0x22ae   :  { %v1386_v37 = vor.u32 1.1754944e-38, %v1385_v34  ;;  %vm1384_vm10 = vcmp.eq.f32.partialorder %v1383_v35, 8.507059e+37 }
0x22b2   :  { %v1625_v31 = vpop.eup %1624 }
0x22b3   :  { %v1375_v29 = vmul.f32 %v1625_v31, %v1373_v28  ;;  %vm1380_vm7 = vweird.f32 %v1625_v31 }
0x22b4   :  { %vm1381_vm9 = vmor %vm1379_vm8, %vm1380_vm7 }
0x22b5   :  { %v1376_v32 = vsub.f32 1.0, %v1375_v29 }
0x22b7   :  { %v1377_v33 = vmul.f32 %v1625_v31, %v1376_v32 }
0x22b9   :  { %v1378_v62 = vadd.f32 %v1625_v31, %v1377_v33 }
0x22bb   :  { %v1382_v22 = vsel %vm1381_vm9, %v1625_v31, %v1378_v62 }
0x22bc   :  { %v1387_v23 = vsel %vm1384_vm10, %v1386_v37, %v1382_v22 }
0x22bd   :  { %v1390_v36 = vmul.f32 %v1387_v23, %v1313_v8 }
0x231a   :  { %v1393_v21 = vpop.permute.xlu0 %1392 }
0x231b   :  { %v1395_v24 = vmul.f32 %v1393_v21, %v1387_v23 }
0x231d   :  { %1397 = vrot.lane.b32.xlu1 %v1395_v24, %s1659_s3 }
0x238f   :  { %v1398_v38 = vpop.permute.xlu1 %1397 }
0x2390   :  { %v1400_v39 = vadd.f32 %v1398_v38, %v1390_v36 }
0x2392   :  { %1626 = vtanh.f32 %v1400_v39 }
0x2398   :  { %v1627_v40 = vpop.eup %1626 }
0x2399   :  { %1403 = vrot.lane.b32.xlu2 %v1627_v40, %s1658_s27 }
0x23f3   :  { %v1404_v41 = vpop.permute.xlu2 %1403 }
0x23f4   :  { %v1406_v42 = vmul.f32 %v1404_v41, %v1387_v23 }
0x23f6   :  { %1408 = vrot.lane.b32.xlu0 %v1406_v42, %s1659_s3 }
0x2468   :  { %v1409_v43 = vpop.permute.xlu0 %1408 }
0x2469   :  { %1490 = vmatmul.msk.f32.vlgmr.msrb.gmra.mxu2 %vm184_vm6, %v1409_v43 }
0x24ec   :  { %v1429_v44 = vpop.f32.mrf.mxu2 }
0x24ed   :  { %v1430_v45 = vadd.f32 %v1962_v30, %v1429_v44 }
0x24ef   :  { %v1433_v46 = vrot.slane %v1430_v45, 1  ;;  %1435 = vst.msk [vmem:[%s2116_s9 + $0x7] sm:$0x1] %vm825_vm1, %v1430_v45 }
0x24f1   :  { %1436 = vst.msk [vmem:[%s2116_s9 + $0xf] sm:$0x1] %vm825_vm1, %v1433_v46 }
0x24f2   :  { %1441 = vsyncpa [#allocation3], 1 }

</bundles_post_ra>
